<compile_context>
chip_gen: v7x
topology: tpu7x:2x2x1
jax: 0.10.0
libtpu: 0.0.40
codegen_flags: <defaults>
</compile_context>

<pallas_src>
import functools

import jax
import jax.numpy as jnp
from jax.experimental import pallas as pl
from jax.experimental.pallas import tpu as pltpu

MXU_DTYPE = jnp.bfloat16   # matmul operand / activation storage dtype
F32 = jnp.float32


def _round_up(x, m):
    return (x + m - 1) // m * m


# ----------------------------- weight expansion -------------------------------

def _band_weight_3x3(w_oihw, width, dtype=MXU_DTYPE):
    """(Cout,Cin,3,3) conv weight -> (3*W*Cin, W*Cout) banded matrix.

    Row-block dy pairs with input rows shifted by dy-1; within a block,
    entry [wi*Cin+ci, wo*Cout+co] = w[co, ci, dy, wi-wo+1] (zero outside the band),
    reproducing a stride-1 'same' 3x3 conv on the lane-dense (H, W*Cin) layout.
    """
    cout, cin = int(w_oihw.shape[0]), int(w_oihw.shape[1])
    w = w_oihw.astype(F32)
    blocks = []
    for dy in range(3):
        b = jnp.zeros((width, cin, width, cout), F32)
        for dx in range(3):
            e = jnp.eye(width, k=-(dx - 1), dtype=F32)
            b = b + jnp.einsum("pq,oc->pcqo", e, w[:, :, dy, dx])
        blocks.append(b.reshape(width * cin, width * cout))
    return jnp.concatenate(blocks, axis=0).astype(dtype)


def _kron_weight_1x1(w_io, width, dtype=MXU_DTYPE):
    """(Cin,Cout) 1x1 conv weight -> block-diagonal (W*Cin, W*Cout) matrix."""
    return jnp.kron(jnp.eye(width, dtype=F32), w_io.astype(F32)).astype(dtype)


def _bias_row(bias, width):
    c = int(bias.shape[0])
    return jnp.tile(bias.astype(F32), (width,)).reshape(1, width * c)


# ------------------------------ 3x3 conv kernel -------------------------------

def _conv3x3_kernel(*refs, n_src, has_pre, has_bias, has_res, relu, want_stats):
    idx = 0
    xs = refs[idx:idx + n_src]; idx += n_src
    bs = refs[idx:idx + n_src]; idx += n_src
    pre_s = pre_b = None
    if has_pre:
        pre_s, pre_b = refs[idx], refs[idx + 1]; idx += 2
    bias_ref = None
    if has_bias:
        bias_ref = refs[idx]; idx += 1
    res_ref = None
    if has_res:
        res_ref = refs[idx]; idx += 1
    o_ref = refs[idx]; idx += 1
    stats_ref = refs[idx] if want_stats else None

    h = o_ref.shape[0]
    acc = None
    for s in range(n_src):                       # virtual channel concat: shared accumulator
        x = xs[s][...].astype(F32)
        if has_pre and s == 0:                   # fused BN-apply + ReLU on the conv input
            x = jnp.maximum(x * pre_s[...] + pre_b[...], 0.0)
        wcs = x.shape[1]
        zero = jnp.zeros((1, wcs), F32)
        x_m1 = jnp.concatenate([zero, x[:h - 1, :]], axis=0)   # x_m1[y] = x[y-1]
        x_p1 = jnp.concatenate([x[1:, :], zero], axis=0)       # x_p1[y] = x[y+1]
        xcat = jnp.concatenate([x_m1, x, x_p1], axis=1).astype(MXU_DTYPE)  # (h, 3*wcs)
        p = jnp.dot(xcat, bs[s][...], preferred_element_type=F32)
        acc = p if acc is None else acc + p
    if has_bias:
        acc = acc + bias_ref[...]
    if want_stats:                               # BN partials on the raw conv output
        stats_ref[...] = jnp.concatenate(
            [jnp.sum(acc, axis=0, keepdims=True),
             jnp.sum(acc * acc, axis=0, keepdims=True)], axis=0)
    val = acc
    if has_res:
        val = val + res_ref[...].astype(F32)
    if relu:
        val = jnp.maximum(val, 0.0)
    o_ref[...] = val.astype(o_ref.dtype)


def conv3x3_fused(inputs_ld, weights_oihw, width, bias=None, residual=None, relu=False,
                  want_stats=False, pre_affine=None, out_dtype=MXU_DTYPE):
    """'same' stride-1 3x3 conv over a list of lane-dense (N, H, W*Cs) sources."""
    n, h, _ = inputs_ld[0].shape
    cout = int(weights_oihw[0].shape[0])
    wcout = width * cout
    if pre_affine is not None:
        assert len(inputs_ld) == 1

    xs = [x.astype(MXU_DTYPE) for x in inputs_ld]
    bmats = [_band_weight_3x3(w, width) for w in weights_oihw]

    args = list(xs) + list(bmats)
    in_specs = ([pl.BlockSpec((None, h, x.shape[2]), lambda i: (i, 0, 0)) for x in xs] +
                [pl.BlockSpec(b.shape, lambda i: (0, 0)) for b in bmats])
    if pre_affine is not None:
        scale_row, shift_row = pre_affine
        args += [scale_row, shift_row]
        in_specs += [pl.BlockSpec(scale_row.shape, lambda i: (0, 0)),
                     pl.BlockSpec(shift_row.shape, lambda i: (0, 0))]
    if bias is not None:
        args.append(_bias_row(bias, width))
        in_specs.append(pl.BlockSpec((1, wcout), lambda i: (0, 0)))
    if residual is not None:
        args.append(residual)
        in_specs.append(pl.BlockSpec((None, h, wcout), lambda i: (i, 0, 0)))

    out_shape = [jax.ShapeDtypeStruct((n, h, wcout), out_dtype)]
    out_specs = [pl.BlockSpec((None, h, wcout), lambda i: (i, 0, 0))]
    if want_stats:
        out_shape.append(jax.ShapeDtypeStruct((n, 2, wcout), F32))
        out_specs.append(pl.BlockSpec((None, 2, wcout), lambda i: (i, 0, 0)))

    kern = functools.partial(_conv3x3_kernel, n_src=len(xs),
                             has_pre=pre_affine is not None,
                             has_bias=bias is not None,
                             has_res=residual is not None,
                             relu=relu, want_stats=want_stats)
    k_total = sum(int(b.shape[0]) for b in bmats)
    bytes_in = sum(int(x.size) * x.dtype.itemsize for x in xs)
    return pl.pallas_call(
        kern,
        out_shape=tuple(out_shape) if want_stats else out_shape[0],
        grid=(n,),
        in_specs=in_specs,
        out_specs=tuple(out_specs) if want_stats else out_specs[0],
        compiler_params=pltpu.CompilerParams(dimension_semantics=("parallel",)),
        cost_estimate=pl.CostEstimate(
            flops=2 * n * h * k_total * wcout,
            transcendentals=0,
            bytes_accessed=int(bytes_in) + 4 * n * h * wcout),
    )(*args)


# ------------------------------ 1x1 conv kernel -------------------------------

def _conv1x1_kernel(*refs, n_src, has_bias, has_res, relu):
    xs = refs[:n_src]
    wks = refs[n_src:2 * n_src]
    idx = 2 * n_src
    bias_ref = None
    if has_bias:
        bias_ref = refs[idx]; idx += 1
    res_ref = None
    if has_res:
        res_ref = refs[idx]; idx += 1
    o_ref = refs[idx]

    acc = None
    for s in range(n_src):
        p = jnp.dot(xs[s][...], wks[s][...], preferred_element_type=F32)
        acc = p if acc is None else acc + p
    if has_bias:
        acc = acc + bias_ref[...]
    if has_res:
        acc = acc + res_ref[...].astype(F32)
    if relu:
        acc = jnp.maximum(acc, 0.0)
    o_ref[...] = acc.astype(o_ref.dtype)


def conv1x1_fused(inputs_2d, weights_io, width, bias=None, residual=None, relu=False,
                  out_dtype=MXU_DTYPE, max_rows=512):
    """1x1 conv over a list of lane-dense (rows, W*Cs) sources (virtual channel concat)."""
    rows = int(inputs_2d[0].shape[0])
    cout = int(weights_io[0].shape[1])
    wcout = width * cout
    tile = min(max_rows, _round_up(rows, 16))
    rows_p = _round_up(rows, tile)

    def pad_rows(a):
        return a if a.shape[0] == rows_p else jnp.pad(a, ((0, rows_p - a.shape[0]), (0, 0)))

    xs = [pad_rows(x.astype(MXU_DTYPE)) for x in inputs_2d]
    wks = [_kron_weight_1x1(w, width) for w in weights_io]

    args = list(xs) + list(wks)
    in_specs = ([pl.BlockSpec((tile, x.shape[1]), lambda i: (i, 0)) for x in xs] +
                [pl.BlockSpec(w.shape, lambda i: (0, 0)) for w in wks])
    if bias is not None:
        args.append(_bias_row(bias, width))
        in_specs.append(pl.BlockSpec((1, wcout), lambda i: (0, 0)))
    if residual is not None:
        args.append(pad_rows(residual))
        in_specs.append(pl.BlockSpec((tile, wcout), lambda i: (i, 0)))

    kern = functools.partial(_conv1x1_kernel, n_src=len(xs), has_bias=bias is not None,
                             has_res=residual is not None, relu=relu)
    k_total = sum(int(w.shape[0]) for w in wks)
    out = pl.pallas_call(
        kern,
        out_shape=jax.ShapeDtypeStruct((rows_p, wcout), out_dtype),
        grid=(rows_p // tile,),
        in_specs=in_specs,
        out_specs=pl.BlockSpec((tile, wcout), lambda i: (i, 0)),
        compiler_params=pltpu.CompilerParams(dimension_semantics=("parallel",)),
        cost_estimate=pl.CostEstimate(
            flops=2 * rows_p * k_total * wcout,
            transcendentals=0,
            bytes_accessed=2 * rows_p * (k_total + wcout)),
    )(*args)
    return out if rows_p == rows else out[:rows]


# ------------------- BN apply (+residual, +ReLU), lane-dense -------------------

def _affine_kernel(x_ref, s_ref, b_ref, *rest, has_res, relu):
    res_ref = rest[0] if has_res else None
    o_ref = rest[-1]
    y = x_ref[...].astype(F32) * s_ref[...] + b_ref[...]
    if has_res:
        y = y + res_ref[...].astype(F32)
    if relu:
        y = jnp.maximum(y, 0.0)
    o_ref[...] = y.astype(o_ref.dtype)


def affine_fused(x_2d, scale_row, shift_row, residual=None, relu=True,
                 out_dtype=MXU_DTYPE, max_rows=1024):
    rows, wc = int(x_2d.shape[0]), int(x_2d.shape[1])
    tile = min(max_rows, _round_up(rows, 16))
    rows_p = _round_up(rows, tile)

    def pad_rows(a):
        return a if a.shape[0] == rows_p else jnp.pad(a, ((0, rows_p - a.shape[0]), (0, 0)))

    args = [pad_rows(x_2d), scale_row, shift_row]
    in_specs = [pl.BlockSpec((tile, wc), lambda i: (i, 0)),
                pl.BlockSpec((1, wc), lambda i: (0, 0)),
                pl.BlockSpec((1, wc), lambda i: (0, 0))]
    if residual is not None:
        args.append(pad_rows(residual))
        in_specs.append(pl.BlockSpec((tile, wc), lambda i: (i, 0)))
    out = pl.pallas_call(
        functools.partial(_affine_kernel, has_res=residual is not None, relu=relu),
        out_shape=jax.ShapeDtypeStruct((rows_p, wc), out_dtype),
        grid=(rows_p // tile,),
        in_specs=in_specs,
        out_specs=pl.BlockSpec((tile, wc), lambda i: (i, 0)),
        compiler_params=pltpu.CompilerParams(dimension_semantics=("parallel",)),
    )(*args)
    return out if rows_p == rows else out[:rows]


def bn_scale_shift(stats, gamma, beta, count, width, channels, eps=1e-5):
    """Reduce per-image (sum, sum_sq) partials to exact batch statistics and return
    lane-dense (1, W*C) scale/shift rows (training-mode BatchNorm2d, biased variance)."""
    tot = jnp.sum(stats.astype(F32), axis=0).reshape(2, width, channels).sum(axis=1)
    mean = tot[0] / count
    var = jnp.maximum(tot[1] / count - mean * mean, 0.0)
    # TODO(synk): E[x^2]-E[x]^2 cancels badly at very large N*H*W; use a centered pass then.
    scale = gamma.astype(F32) * jax.lax.rsqrt(var + eps)
    shift = beta.astype(F32) - mean * scale
    return (jnp.tile(scale, (width,)).reshape(1, width * channels),
            jnp.tile(shift, (width,)).reshape(1, width * channels))


# ------------------------ fused bilinear 2x upsample --------------------------

def _interp_matrix(in_size, out_size):
    """Interpolation matrix matching PyTorch bilinear, align_corners=False."""
    d = jnp.arange(out_size, dtype=F32)
    src = jnp.maximum((d + 0.5) * (in_size / out_size) - 0.5, 0.0)
    i0 = jnp.minimum(jnp.floor(src).astype(jnp.int32), in_size - 1)
    i1 = jnp.minimum(i0 + 1, in_size - 1)
    w1 = src - i0.astype(F32)
    w0 = 1.0 - w1
    return (w0[:, None] * jax.nn.one_hot(i0, in_size, dtype=F32) +
            w1[:, None] * jax.nn.one_hot(i1, in_size, dtype=F32))


def _upsample_kernel(x_ref, ah_ref, bw_ref, o_ref):
    # out(2H, 2W*C) = Ah(2H,H) @ x(H, W*C) @ (Aw.T (x) I_C)(W*C, 2W*C); lane-dense in/out.
    t = jnp.dot(ah_ref[...], x_ref[...], preferred_element_type=F32)
    o_ref[...] = jnp.dot(t.astype(bw_ref.dtype), bw_ref[...],
                         preferred_element_type=F32).astype(o_ref.dtype)


def upsample2x_bilinear(x_ld, width, channels):
    """F.interpolate(scale_factor=2, mode='bilinear') on a lane-dense (N, H, W*C) map."""
    n, h, wc = x_ld.shape
    oh, ow = 2 * h, 2 * width
    dt = x_ld.dtype
    ah = _interp_matrix(h, oh).astype(dt)
    bw = jnp.kron(_interp_matrix(width, ow).T, jnp.eye(channels, dtype=F32)).astype(dt)
    return pl.pallas_call(
        _upsample_kernel,
        out_shape=jax.ShapeDtypeStruct((n, oh, ow * channels), dt),
        grid=(n,),
        in_specs=[pl.BlockSpec((None, h, wc), lambda i: (i, 0, 0)),
                  pl.BlockSpec((oh, h), lambda i: (0, 0)),
                  pl.BlockSpec((wc, ow * channels), lambda i: (0, 0))],
        out_specs=pl.BlockSpec((None, oh, ow * channels), lambda i: (i, 0, 0)),
        compiler_params=pltpu.CompilerParams(dimension_semantics=("parallel",)),
        cost_estimate=pl.CostEstimate(
            flops=2 * n * (oh * h * wc + oh * wc * ow * channels),
            transcendentals=0,
            bytes_accessed=int(x_ld.size) * x_ld.dtype.itemsize + 4 * n * oh * ow * channels),
    )(x_ld, ah, bw)


# --------------------------- grid_sample (JAX glue) ----------------------------

def grid_sample_border(x_nhwc, flow_up_nhwc):
    """F.grid_sample(x, make_grid + flow_norm, bilinear, padding_mode='border',
    align_corners=False); the flow normalisation is folded into the coordinate math."""
    # TODO(synk): the data-dependent 4-tap gather stays in plain JAX/XLA; a Pallas version
    #             needs per-row DMA gathers (or one-hot matmuls) of the NHWC source.
    n, h, w, c = x_nhwc.shape
    gx = jnp.linspace(-1.0, 1.0, w, dtype=F32).reshape(1, 1, w)
    gy = jnp.linspace(-1.0, 1.0, h, dtype=F32).reshape(1, h, 1)
    u = gx + 2.0 * flow_up_nhwc[..., 0] / (w / 2 - 1)
    v = gy + 2.0 * flow_up_nhwc[..., 1] / (h / 2 - 1)
    ix = jnp.clip(((u + 1.0) * w - 1.0) * 0.5, 0.0, w - 1.0)
    iy = jnp.clip(((v + 1.0) * h - 1.0) * 0.5, 0.0, h - 1.0)
    x0 = jnp.floor(ix)
    y0 = jnp.floor(iy)
    wx1 = ix - x0
    wx0 = 1.0 - wx1
    wy1 = iy - y0
    wy0 = 1.0 - wy1
    x0i = jnp.clip(x0.astype(jnp.int32), 0, w - 1)
    x1i = jnp.clip(x0i + 1, 0, w - 1)
    y0i = jnp.clip(y0.astype(jnp.int32), 0, h - 1)
    y1i = jnp.clip(y0i + 1, 0, h - 1)
    xf = x_nhwc.astype(F32).reshape(n, h * w, c)

    def gather(yi, xi):
        flat = (yi * w + xi).reshape(n, h * w, 1)
        flat = jnp.broadcast_to(flat, (n, h * w, c))
        return jnp.take_along_axis(xf, flat, axis=1).reshape(n, h, w, c)

    v00 = gather(y0i, x0i)
    v01 = gather(y0i, x1i)
    v10 = gather(y1i, x0i)
    v11 = gather(y1i, x1i)
    return (v00 * (wy0 * wx0)[..., None] + v01 * (wy0 * wx1)[..., None] +
            v10 * (wy1 * wx0)[..., None] + v11 * (wy1 * wx1)[..., None])


# -------------------------------- FusionBlock ----------------------------------

def fusion_block_forward(params, T1_nchw, T2_nchw, pose_nchw, clothes_nchw, flow_nhwc):
    def to_ld(x_nchw, dtype=MXU_DTYPE):
        b, c, hh, ww = x_nchw.shape
        return jnp.transpose(x_nchw, (0, 2, 3, 1)).reshape(b, hh, ww * c).astype(dtype)

    n, c_t1, h1, w1 = T1_nchw.shape
    _, c_t2, h2, w2 = T2_nchw.shape          # h2 = 2*h1, w2 = 2*w1
    c_pe = pose_nchw.shape[1]
    c_ce = clothes_nchw.shape[1]

    # module boundary: NCHW -> lane-dense (N, H, W*C) bf16, exactly once
    T1_ld = to_ld(T1_nchw)
    T2_ld = to_ld(T2_nchw)
    pose_ld = to_ld(pose_nchw)
    clothes_ld = to_ld(clothes_nchw)
    flow_ld = flow_nhwc.astype(F32).reshape(n, h1, w1 * 2)   # flow path stays f32

    # ---- T1 = interpolate(T1, 2x) + conv_cloth(clothes)  (1x1 conv + fused residual) ----
    T1_up = upsample2x_bilinear(T1_ld, w1, c_t1)                       # (n, h2, w2*c_t1)
    w_cloth_io = params["conv_cloth_w"][:, :, 0, 0].T                  # (c_ce, c_t1)
    T1_new = conv1x1_fused([clothes_ld.reshape(n * h2, w2 * c_ce)], [w_cloth_io], width=w2,
                           bias=params["conv_cloth_b"],
                           residual=T1_up.reshape(n * h2, w2 * c_t1),
                           out_dtype=F32).reshape(n, h2, w2, c_t1)

    # ---- flow upsample + warp T1 (grid_sample, flow-norm folded into coordinates) -------
    flow_up_ld = upsample2x_bilinear(flow_ld, w1, 2)                   # (n, h2, w2*2) f32
    warped_T1 = grid_sample_border(T1_new, flow_up_ld.reshape(n, h2, w2, 2))
    warped_ld = warped_T1.reshape(n, h2, w2 * c_t1).astype(MXU_DTYPE)

    # ---- pose_feat = relu(conv_pose(T2))  (3x3 conv + bias + ReLU fused) ----------------
    pose_feat_ld = conv3x3_fused([T2_ld], [params["conv_pose_w"]], width=w2,
                                 bias=params["conv_pose_b"], relu=True)

    # ---- flow = flow_up + conv_warped_T2(cat([warped_T1, pose_feat], 1)) ----------------
    w_wt2 = params["conv_wT2_w"]
    flow_out_ld = conv3x3_fused([warped_ld, pose_feat_ld],
                                [w_wt2[:, :c_t1], w_wt2[:, c_t1:]], width=w2,
                                bias=params["conv_wT2_b"], residual=flow_up_ld,
                                out_dtype=F32)
    flow_out = flow_out_ld.reshape(n, h2, w2, 2)

    # ---- ResNetBlock(scale=up) on cat([T2, pose_encoder_i, warped_T1], 1) ---------------
    # Upsample(2x,bilinear) and a 1x1 conv commute exactly (bilinear weights sum to 1), so
    # the split 1x1 'scale' conv runs at low res (no concat) and the result is upsampled.
    w_scale = params["res_scale_w"][:, :, 0, 0]                        # (c_res, 24)
    c_res = int(w_scale.shape[0])
    s_low = conv1x1_fused(
        [T2_ld.reshape(n * h2, w2 * c_t2),
         pose_ld.reshape(n * h2, w2 * c_pe),
         warped_ld.reshape(n * h2, w2 * c_t1)],
        [w_scale[:, :c_t2].T, w_scale[:, c_t2:c_t2 + c_pe].T, w_scale[:, c_t2 + c_pe:].T],
        width=w2, bias=params["res_scale_b"]).reshape(n, h2, w2 * c_res)
    x_up = upsample2x_bilinear(s_low, w2, c_res)                       # (n, h4, w4*c_res)
    h4, w4 = 2 * h2, 2 * w2
    count = n * h4 * w4

    # conv1 (+BN stats) ; (BN1+ReLU fused into conv2) conv2 (+BN stats) ; BN2 + res + ReLU
    y1, st1 = conv3x3_fused([x_up], [params["res_conv1_w"]], width=w4, want_stats=True)
    sc1, sh1 = bn_scale_shift(st1, params["res_bn1_g"], params["res_bn1_b"], count, w4, c_res)
    y2, st2 = conv3x3_fused([y1], [params["res_conv2_w"]], width=w4, want_stats=True,
                            pre_affine=(sc1, sh1))
    sc2, sh2 = bn_scale_shift(st2, params["res_bn2_g"], params["res_bn2_b"], count, w4, c_res)
    T2_out_ld = affine_fused(y2.reshape(n * h4, w4 * c_res), sc2, sh2,
                             residual=x_up.reshape(n * h4, w4 * c_res), relu=True,
                             out_dtype=F32)
    T2_out = T2_out_ld.reshape(n, h4, w4, c_res)

    # module boundary back to torch layouts (flow stays NHWC, as in the torch module)
    T1_out = jnp.transpose(T1_new.astype(F32), (0, 3, 1, 2))
    T2_out = jnp.transpose(T2_out, (0, 3, 1, 2))
    return T1_out, T2_out, flow_out


# ------------------------------------- main ------------------------------------

if __name__ == "__main__":
    key = jax.random.PRNGKey(0)
    ks = jax.random.split(key, 24)

    N, H, W = 2, 8, 8                # T1 / flow resolution (upsampled to 16x16 inside)
    C_t1, C_ce, C_t2, C_pe = 8, 8, 8, 8
    C_pose_out, C_res_out = 8, 8
    C_res_in = C_t2 + C_pe + C_t1    # 24

    def nrm(k, shape, s=0.1):
        return (s * jax.random.normal(k, shape)).astype(jnp.float32)

    params = {
        "conv_cloth_w": nrm(ks[0], (C_t1, C_ce, 1, 1)),
        "conv_cloth_b": nrm(ks[1], (C_t1,)),
        "conv_pose_w": nrm(ks[2], (C_pose_out, C_t2, 3, 3)),
        "conv_pose_b": nrm(ks[3], (C_pose_out,)),
        "conv_wT2_w": nrm(ks[4], (2, C_t1 + C_pose_out, 3, 3)),
        "conv_wT2_b": nrm(ks[5], (2,)),
        "res_scale_w": nrm(ks[6], (C_res_out, C_res_in, 1, 1)),
        "res_scale_b": nrm(ks[7], (C_res_out,)),
        "res_conv1_w": nrm(ks[8], (C_res_out, C_res_out, 3, 3)),
        "res_bn1_g": (1.0 + 0.05 * jax.random.normal(ks[9], (C_res_out,))).astype(jnp.float32),
        "res_bn1_b": nrm(ks[10], (C_res_out,)),
        "res_conv2_w": nrm(ks[11], (C_res_out, C_res_out, 3, 3)),
        "res_bn2_g": (1.0 + 0.05 * jax.random.normal(ks[12], (C_res_out,))).astype(jnp.float32),
        "res_bn2_b": nrm(ks[13], (C_res_out,)),
    }

    T1 = nrm(ks[14], (N, C_t1, H, W), s=1.0)
    T2 = nrm(ks[15], (N, C_t2, 2 * H, 2 * W), s=1.0)
    pose_encoder_i = nrm(ks[16], (N, C_pe, 2 * H, 2 * W), s=1.0)
    clothes_encoder_i = nrm(ks[17], (N, C_ce, 2 * H, 2 * W), s=1.0)
    flow = nrm(ks[18], (N, H, W, 2), s=1.0)

    fwd = jax.jit(fusion_block_forward)
    T1_out, T2_out, flow_out = fwd(params, T1, T2, pose_encoder_i, clothes_encoder_i, flow)
    jax.block_until_ready((T1_out, T2_out, flow_out))

    assert T1_out.shape == (N, C_t1, 2 * H, 2 * W)
    assert T2_out.shape == (N, C_res_out, 4 * H, 4 * W)
    assert flow_out.shape == (N, 2 * H, 2 * W, 2)
    assert all(bool(jnp.all(jnp.isfinite(o))) for o in (T1_out, T2_out, flow_out))
    print("KERNEL_OK")
</pallas_src>

<mosaic_0001>
module attributes {stable_mosaic.version = 11 : i64} {
  func.func private @main(%arg0: i32) attributes {dimension_semantics = [#tpu.dimension_semantics<core_parallel>], iteration_bounds = array<i64: 2>, tpu.core_type = #tpu.core_type<sc_scalar_subcore>, window_params = []} {
    return
  }
}

module attributes {stable_mosaic.version = 11 : i64} {
  func.func private @main(%arg0: i32) attributes {dimension_semantics = [#tpu.dimension_semantics<core_parallel>], iteration_bounds = array<i64: 2>, tpu.core_type = #tpu.core_type<sc_scalar_subcore>, window_params = []} {
    return
  }
}

module attributes {stable_mosaic.version = 11 : i64} {
  func.func @_upsample_kernel(%arg0: i32, %arg1: memref<1x8x16xf32, #tpu.memory_space<vmem>>, %arg2: memref<16x8xf32, #tpu.memory_space<vmem>>, %arg3: memref<16x32xf32, #tpu.memory_space<vmem>>, %arg4: memref<1x16x32xf32, #tpu.memory_space<vmem>>) attributes {dimension_semantics = [#tpu.dimension_semantics<parallel>], iteration_bounds = array<i64: 2>, scalar_prefetch = 0 : i64, scratch_operands = 0 : i64, tpu.core_type = #tpu.core_type<tc>, window_params = [{transform_indices = @transform_0, window_bounds = array<i64: 1, 8, 16>}, {pipeline_mode = #tpu.pipeline_mode<synchronous>, transform_indices = @transform_1, window_bounds = array<i64: 16, 8>}, {pipeline_mode = #tpu.pipeline_mode<synchronous>, transform_indices = @transform_2, window_bounds = array<i64: 16, 32>}, {transform_indices = @transform_3, window_bounds = array<i64: 1, 16, 32>}]} {
    %c0 = arith.constant 0 : index
    %c0_0 = arith.constant 0 : index
    %0 = vector.load %arg2[%c0, %c0_0] : memref<16x8xf32, #tpu.memory_space<vmem>>, vector<16x8xf32>
    %c0_1 = arith.constant 0 : index
    %c0_2 = arith.constant 0 : index
    %c0_3 = arith.constant 0 : index
    %1 = vector.load %arg1[%c0_1, %c0_2, %c0_3] : memref<1x8x16xf32, #tpu.memory_space<vmem>>, vector<1x8x16xf32>
    %2 = vector.shape_cast %1 : vector<1x8x16xf32> to vector<8x16xf32>
    %cst = arith.constant dense<0.000000e+00> : vector<16x16xf32>
    %3 = tpu.matmul %0, %2, %cst {dimension_numbers = #tpu.dot_dimension_numbers<[1], [0], [0], [1], [0, 0, 1, 1], [], []>} : vector<16x8xf32>, vector<8x16xf32>, vector<16x16xf32> -> vector<16x16xf32>
    %c0_4 = arith.constant 0 : index
    %c0_5 = arith.constant 0 : index
    %4 = vector.load %arg3[%c0_4, %c0_5] : memref<16x32xf32, #tpu.memory_space<vmem>>, vector<16x32xf32>
    %cst_6 = arith.constant dense<0.000000e+00> : vector<16x32xf32>
    %5 = tpu.matmul %3, %4, %cst_6 {dimension_numbers = #tpu.dot_dimension_numbers<[1], [0], [0], [1], [0, 0, 1, 1], [], []>} : vector<16x16xf32>, vector<16x32xf32>, vector<16x32xf32> -> vector<16x32xf32>
    %c0_7 = arith.constant 0 : index
    %c0_8 = arith.constant 0 : index
    %c0_9 = arith.constant 0 : index
    %6 = vector.load %arg4[%c0_7, %c0_8, %c0_9] : memref<1x16x32xf32, #tpu.memory_space<vmem>>, vector<1x16x32xf32>
    %7 = vector.shape_cast %6 : vector<1x16x32xf32> to vector<16x32xf32>
    %8 = vector.shape_cast %5 : vector<16x32xf32> to vector<1x16x32xf32>
    tpu.vector_store %arg4[%c0_7, %c0_8, %c0_9], %8 {strides = array<i32>} : memref<1x16x32xf32, #tpu.memory_space<vmem>>, vector<1x16x32xf32>,
    return
  }
  func.func @transform_0(%arg0: i32) -> (i32, i32, i32) {
    %c0_i32 = arith.constant 0 : i32
    %c0_i32_0 = arith.constant 0 : i32
    %c0_i32_1 = arith.constant 0 : i32
    return %arg0, %c0_i32, %c0_i32_0 : i32, i32, i32
  }
  func.func @transform_1(%arg0: i32) -> (i32, i32) {
    %c0_i32 = arith.constant 0 : i32
    %c0_i32_0 = arith.constant 0 : i32
    %c0_i32_1 = arith.constant 0 : i32
    return %c0_i32, %c0_i32_0 : i32, i32
  }
  func.func @transform_2(%arg0: i32) -> (i32, i32) {
    %c0_i32 = arith.constant 0 : i32
    %c0_i32_0 = arith.constant 0 : i32
    %c0_i32_1 = arith.constant 0 : i32
    return %c0_i32, %c0_i32_0 : i32, i32
  }
  func.func @transform_3(%arg0: i32) -> (i32, i32, i32) {
    %c0_i32 = arith.constant 0 : i32
    %c0_i32_0 = arith.constant 0 : i32
    %c0_i32_1 = arith.constant 0 : i32
    return %arg0, %c0_i32, %c0_i32_0 : i32, i32, i32
  }
}

module attributes {stable_mosaic.version = 11 : i64} {
  func.func @_upsample_kernel(%arg0: i32, %arg1: memref<1x8x64xbf16, #tpu.memory_space<vmem>>, %arg2: memref<16x8xbf16, #tpu.memory_space<vmem>>, %arg3: memref<64x128xbf16, #tpu.memory_space<vmem>>, %arg4: memref<1x16x128xbf16, #tpu.memory_space<vmem>>) attributes {dimension_semantics = [#tpu.dimension_semantics<parallel>], iteration_bounds = array<i64: 2>, scalar_prefetch = 0 : i64, scratch_operands = 0 : i64, tpu.core_type = #tpu.core_type<tc>, window_params = [{transform_indices = @transform_0, window_bounds = array<i64: 1, 8, 64>}, {pipeline_mode = #tpu.pipeline_mode<synchronous>, transform_indices = @transform_1, window_bounds = array<i64: 16, 8>}, {pipeline_mode = #tpu.pipeline_mode<synchronous>, transform_indices = @transform_2, window_bounds = array<i64: 64, 128>}, {transform_indices = @transform_3, window_bounds = array<i64: 1, 16, 128>}]} {
    %c0 = arith.constant 0 : index
    %c0_0 = arith.constant 0 : index
    %0 = vector.load %arg2[%c0, %c0_0] : memref<16x8xbf16, #tpu.memory_space<vmem>>, vector<16x8xbf16>
    %c0_1 = arith.constant 0 : index
    %c0_2 = arith.constant 0 : index
    %c0_3 = arith.constant 0 : index
    %1 = vector.load %arg1[%c0_1, %c0_2, %c0_3] : memref<1x8x64xbf16, #tpu.memory_space<vmem>>, vector<1x8x64xbf16>
    %2 = vector.shape_cast %1 : vector<1x8x64xbf16> to vector<8x64xbf16>
    %cst = arith.constant dense<0.000000e+00> : vector<16x64xf32>
    %3 = tpu.matmul %0, %2, %cst {dimension_numbers = #tpu.dot_dimension_numbers<[1], [0], [0], [1], [0, 0, 1, 1], [], []>} : vector<16x8xbf16>, vector<8x64xbf16>, vector<16x64xf32> -> vector<16x64xf32>
    %4 = arith.truncf %3 : vector<16x64xf32> to vector<16x64xbf16>
    %c0_4 = arith.constant 0 : index
    %c0_5 = arith.constant 0 : index
    %5 = vector.load %arg3[%c0_4, %c0_5] : memref<64x128xbf16, #tpu.memory_space<vmem>>, vector<64x128xbf16>
    %cst_6 = arith.constant dense<0.000000e+00> : vector<16x128xf32>
    %6 = tpu.matmul %4, %5, %cst_6 {dimension_numbers = #tpu.dot_dimension_numbers<[1], [0], [0], [1], [0, 0, 1, 1], [], []>} : vector<16x64xbf16>, vector<64x128xbf16>, vector<16x128xf32> -> vector<16x128xf32>
    %7 = arith.truncf %6 : vector<16x128xf32> to vector<16x128xbf16>
    %c0_7 = arith.constant 0 : index
    %c0_8 = arith.constant 0 : index
    %c0_9 = arith.constant 0 : index
    %8 = vector.load %arg4[%c0_7, %c0_8, %c0_9] : memref<1x16x128xbf16, #tpu.memory_space<vmem>>, vector<1x16x128xbf16>
    %9 = vector.shape_cast %8 : vector<1x16x128xbf16> to vector<16x128xbf16>
    %10 = vector.shape_cast %7 : vector<16x128xbf16> to vector<1x16x128xbf16>
    tpu.vector_store %arg4[%c0_7, %c0_8, %c0_9], %10 {strides = array<i32>} : memref<1x16x128xbf16, #tpu.memory_space<vmem>>, vector<1x16x128xbf16>,
    return
  }
  func.func @transform_0(%arg0: i32) -> (i32, i32, i32) {
    %c0_i32 = arith.constant 0 : i32
    %c0_i32_0 = arith.constant 0 : i32
    %c0_i32_1 = arith.constant 0 : i32
    return %arg0, %c0_i32, %c0_i32_0 : i32, i32, i32
  }
  func.func @transform_1(%arg0: i32) -> (i32, i32) {
    %c0_i32 = arith.constant 0 : i32
    %c0_i32_0 = arith.constant 0 : i32
    %c0_i32_1 = arith.constant 0 : i32
    return %c0_i32, %c0_i32_0 : i32, i32
  }
  func.func @transform_2(%arg0: i32) -> (i32, i32) {
    %c0_i32 = arith.constant 0 : i32
    %c0_i32_0 = arith.constant 0 : i32
    %c0_i32_1 = arith.constant 0 : i32
    return %c0_i32, %c0_i32_0 : i32, i32
  }
  func.func @transform_3(%arg0: i32) -> (i32, i32, i32) {
    %c0_i32 = arith.constant 0 : i32
    %c0_i32_0 = arith.constant 0 : i32
    %c0_i32_1 = arith.constant 0 : i32
    return %arg0, %c0_i32, %c0_i32_0 : i32, i32, i32
  }
}

module attributes {stable_mosaic.version = 11 : i64} {
  func.func @_conv1x1_kernel(%arg0: i32, %arg1: memref<32x128xbf16, #tpu.memory_space<vmem>>, %arg2: memref<128x128xbf16, #tpu.memory_space<vmem>>, %arg3: memref<1x128xf32, #tpu.memory_space<vmem>>, %arg4: memref<32x128xbf16, #tpu.memory_space<vmem>>, %arg5: memref<32x128xf32, #tpu.memory_space<vmem>>) attributes {dimension_semantics = [#tpu.dimension_semantics<parallel>], iteration_bounds = array<i64: 1>, scalar_prefetch = 0 : i64, scratch_operands = 0 : i64, tpu.core_type = #tpu.core_type<tc>, window_params = [{transform_indices = @transform_0, window_bounds = array<i64: 32, 128>}, {pipeline_mode = #tpu.pipeline_mode<synchronous>, transform_indices = @transform_1, window_bounds = array<i64: 128, 128>}, {pipeline_mode = #tpu.pipeline_mode<synchronous>, transform_indices = @transform_2, window_bounds = array<i64: 1, 128>}, {transform_indices = @transform_3, window_bounds = array<i64: 32, 128>}, {transform_indices = @transform_4, window_bounds = array<i64: 32, 128>}]} {
    %c0 = arith.constant 0 : index
    %c0_0 = arith.constant 0 : index
    %0 = vector.load %arg1[%c0, %c0_0] : memref<32x128xbf16, #tpu.memory_space<vmem>>, vector<32x128xbf16>
    %c0_1 = arith.constant 0 : index
    %c0_2 = arith.constant 0 : index
    %1 = vector.load %arg2[%c0_1, %c0_2] : memref<128x128xbf16, #tpu.memory_space<vmem>>, vector<128x128xbf16>
    %cst = arith.constant dense<0.000000e+00> : vector<32x128xf32>
    %2 = tpu.matmul %0, %1, %cst {dimension_numbers = #tpu.dot_dimension_numbers<[1], [0], [0], [1], [0, 0, 1, 1], [], []>} : vector<32x128xbf16>, vector<128x128xbf16>, vector<32x128xf32> -> vector<32x128xf32>
    %c0_3 = arith.constant 0 : index
    %c0_4 = arith.constant 0 : index
    %3 = vector.load %arg3[%c0_3, %c0_4] : memref<1x128xf32, #tpu.memory_space<vmem>>, vector<1x128xf32>
    %4 = vector.broadcast %3 : vector<1x128xf32> to vector<32x128xf32>
    %5 = arith.addf %2, %4 : vector<32x128xf32>
    %c0_5 = arith.constant 0 : index
    %c0_6 = arith.constant 0 : index
    %6 = vector.load %arg4[%c0_5, %c0_6] : memref<32x128xbf16, #tpu.memory_space<vmem>>, vector<32x128xbf16>
    %7 = arith.extf %6 : vector<32x128xbf16> to vector<32x128xf32>
    %8 = arith.addf %5, %7 : vector<32x128xf32>
    %c0_7 = arith.constant 0 : index
    %c0_8 = arith.constant 0 : index
    %9 = vector.load %arg5[%c0_7, %c0_8] : memref<32x128xf32, #tpu.memory_space<vmem>>, vector<32x128xf32>
    tpu.vector_store %arg5[%c0_7, %c0_8], %8 {strides = array<i32>} : memref<32x128xf32, #tpu.memory_space<vmem>>, vector<32x128xf32>,
    return
  }
  func.func @transform_0(%arg0: i32) -> (i32, i32) {
    %c0_i32 = arith.constant 0 : i32
    %c0_i32_0 = arith.constant 0 : i32
    return %arg0, %c0_i32 : i32, i32
  }
  func.func @transform_1(%arg0: i32) -> (i32, i32) {
    %c0_i32 = arith.constant 0 : i32
    %c0_i32_0 = arith.constant 0 : i32
    %c0_i32_1 = arith.constant 0 : i32
    return %c0_i32, %c0_i32_0 : i32, i32
  }
  func.func @transform_2(%arg0: i32) -> (i32, i32) {
    %c0_i32 = arith.constant 0 : i32
    %c0_i32_0 = arith.constant 0 : i32
    %c0_i32_1 = arith.constant 0 : i32
    return %c0_i32, %c0_i32_0 : i32, i32
  }
  func.func @transform_3(%arg0: i32) -> (i32, i32) {
    %c0_i32 = arith.constant 0 : i32
    %c0_i32_0 = arith.constant 0 : i32
    return %arg0, %c0_i32 : i32, i32
  }
  func.func @transform_4(%arg0: i32) -> (i32, i32) {
    %c0_i32 = arith.constant 0 : i32
    %c0_i32_0 = arith.constant 0 : i32
    return %arg0, %c0_i32 : i32, i32
  }
}

module attributes {stable_mosaic.version = 11 : i64} {
  func.func @_conv3x3_kernel(%arg0: i32, %arg1: memref<1x16x128xbf16, #tpu.memory_space<vmem>>, %arg2: memref<384x128xbf16, #tpu.memory_space<vmem>>, %arg3: memref<1x128xf32, #tpu.memory_space<vmem>>, %arg4: memref<1x16x128xbf16, #tpu.memory_space<vmem>>) attributes {dimension_semantics = [#tpu.dimension_semantics<parallel>], iteration_bounds = array<i64: 2>, scalar_prefetch = 0 : i64, scratch_operands = 0 : i64, tpu.core_type = #tpu.core_type<tc>, window_params = [{transform_indices = @transform_0, window_bounds = array<i64: 1, 16, 128>}, {pipeline_mode = #tpu.pipeline_mode<synchronous>, transform_indices = @transform_1, window_bounds = array<i64: 384, 128>}, {pipeline_mode = #tpu.pipeline_mode<synchronous>, transform_indices = @transform_2, window_bounds = array<i64: 1, 128>}, {transform_indices = @transform_3, window_bounds = array<i64: 1, 16, 128>}]} {
    %c0 = arith.constant 0 : index
    %c0_0 = arith.constant 0 : index
    %c0_1 = arith.constant 0 : index
    %0 = vector.load %arg1[%c0, %c0_0, %c0_1] : memref<1x16x128xbf16, #tpu.memory_space<vmem>>, vector<1x16x128xbf16>
    %1 = vector.shape_cast %0 : vector<1x16x128xbf16> to vector<16x128xbf16>
    %2 = arith.extf %1 : vector<16x128xbf16> to vector<16x128xf32>
    %cst = arith.constant 0.000000e+00 : f32
    %3 = vector.broadcast %cst : f32 to vector<1x128xf32>
    %4 = vector.extract_strided_slice %2 {offsets = [0, 0], sizes = [15, 128], strides = [1, 1]} : vector<16x128xf32> to vector<15x128xf32>
    %5 = tpu.concatenate %3, %4 in 0 : vector<1x128xf32>, vector<15x128xf32> -> vector<16x128xf32>
    %6 = vector.extract_strided_slice %2 {offsets = [1, 0], sizes = [15, 128], strides = [1, 1]} : vector<16x128xf32> to vector<15x128xf32>
    %7 = tpu.concatenate %6, %3 in 0 : vector<15x128xf32>, vector<1x128xf32> -> vector<16x128xf32>
    %8 = tpu.concatenate %5, %2, %7 in 1 : vector<16x128xf32>, vector<16x128xf32>, vector<16x128xf32> -> vector<16x384xf32>
    %9 = arith.truncf %8 : vector<16x384xf32> to vector<16x384xbf16>
    %c0_2 = arith.constant 0 : index
    %c0_3 = arith.constant 0 : index
    %10 = vector.load %arg2[%c0_2, %c0_3] : memref<384x128xbf16, #tpu.memory_space<vmem>>, vector<384x128xbf16>
    %cst_4 = arith.constant dense<0.000000e+00> : vector<16x128xf32>
    %11 = tpu.matmul %9, %10, %cst_4 {dimension_numbers = #tpu.dot_dimension_numbers<[1], [0], [0], [1], [0, 0, 1, 1], [], []>} : vector<16x384xbf16>, vector<384x128xbf16>, vector<16x128xf32> -> vector<16x128xf32>
    %c0_5 = arith.constant 0 : index
    %c0_6 = arith.constant 0 : index
    %12 = vector.load %arg3[%c0_5, %c0_6] : memref<1x128xf32, #tpu.memory_space<vmem>>, vector<1x128xf32>
    %13 = vector.broadcast %12 : vector<1x128xf32> to vector<16x128xf32>
    %14 = arith.addf %11, %13 : vector<16x128xf32>
    %cst_7 = arith.constant 0.000000e+00 : f32
    %15 = vector.broadcast %cst_7 : f32 to vector<16x128xf32>
    %16 = arith.maximumf %14, %15 : vector<16x128xf32>
    %17 = arith.truncf %16 : vector<16x128xf32> to vector<16x128xbf16>
    %c0_8 = arith.constant 0 : index
    %c0_9 = arith.constant 0 : index
    %c0_10 = arith.constant 0 : index
    %18 = vector.load %arg4[%c0_8, %c0_9, %c0_10] : memref<1x16x128xbf16, #tpu.memory_space<vmem>>, vector<1x16x128xbf16>
    %19 = vector.shape_cast %18 : vector<1x16x128xbf16> to vector<16x128xbf16>
    %20 = vector.shape_cast %17 : vector<16x128xbf16> to vector<1x16x128xbf16>
    tpu.vector_store %arg4[%c0_8, %c0_9, %c0_10], %20 {strides = array<i32>} : memref<1x16x128xbf16, #tpu.memory_space<vmem>>, vector<1x16x128xbf16>,
    return
  }
  func.func @transform_0(%arg0: i32) -> (i32, i32, i32) {
    %c0_i32 = arith.constant 0 : i32
    %c0_i32_0 = arith.constant 0 : i32
    %c0_i32_1 = arith.constant 0 : i32
    return %arg0, %c0_i32, %c0_i32_0 : i32, i32, i32
  }
  func.func @transform_1(%arg0: i32) -> (i32, i32) {
    %c0_i32 = arith.constant 0 : i32
    %c0_i32_0 = arith.constant 0 : i32
    %c0_i32_1 = arith.constant 0 : i32
    return %c0_i32, %c0_i32_0 : i32, i32
  }
  func.func @transform_2(%arg0: i32) -> (i32, i32) {
    %c0_i32 = arith.constant 0 : i32
    %c0_i32_0 = arith.constant 0 : i32
    %c0_i32_1 = arith.constant 0 : i32
    return %c0_i32, %c0_i32_0 : i32, i32
  }
  func.func @transform_3(%arg0: i32) -> (i32, i32, i32) {
    %c0_i32 = arith.constant 0 : i32
    %c0_i32_0 = arith.constant 0 : i32
    %c0_i32_1 = arith.constant 0 : i32
    return %arg0, %c0_i32, %c0_i32_0 : i32, i32, i32
  }
}

module attributes {stable_mosaic.version = 11 : i64} {
  func.func @_conv3x3_kernel(%arg0: i32, %arg1: memref<1x16x128xbf16, #tpu.memory_space<vmem>>, %arg2: memref<1x16x128xbf16, #tpu.memory_space<vmem>>, %arg3: memref<384x32xbf16, #tpu.memory_space<vmem>>, %arg4: memref<384x32xbf16, #tpu.memory_space<vmem>>, %arg5: memref<1x32xf32, #tpu.memory_space<vmem>>, %arg6: memref<1x16x32xf32, #tpu.memory_space<vmem>>, %arg7: memref<1x16x32xf32, #tpu.memory_space<vmem>>) attributes {dimension_semantics = [#tpu.dimension_semantics<parallel>], iteration_bounds = array<i64: 2>, scalar_prefetch = 0 : i64, scratch_operands = 0 : i64, tpu.core_type = #tpu.core_type<tc>, window_params = [{transform_indices = @transform_0, window_bounds = array<i64: 1, 16, 128>}, {transform_indices = @transform_1, window_bounds = array<i64: 1, 16, 128>}, {pipeline_mode = #tpu.pipeline_mode<synchronous>, transform_indices = @transform_2, window_bounds = array<i64: 384, 32>}, {pipeline_mode = #tpu.pipeline_mode<synchronous>, transform_indices = @transform_3, window_bounds = array<i64: 384, 32>}, {pipeline_mode = #tpu.pipeline_mode<synchronous>, transform_indices = @transform_4, window_bounds = array<i64: 1, 32>}, {transform_indices = @transform_5, window_bounds = array<i64: 1, 16, 32>}, {transform_indices = @transform_6, window_bounds = array<i64: 1, 16, 32>}]} {
    %c0 = arith.constant 0 : index
    %c0_0 = arith.constant 0 : index
    %c0_1 = arith.constant 0 : index
    %0 = vector.load %arg1[%c0, %c0_0, %c0_1] : memref<1x16x128xbf16, #tpu.memory_space<vmem>>, vector<1x16x128xbf16>
    %1 = vector.shape_cast %0 : vector<1x16x128xbf16> to vector<16x128xbf16>
    %2 = arith.extf %1 : vector<16x128xbf16> to vector<16x128xf32>
    %cst = arith.constant 0.000000e+00 : f32
    %3 = vector.broadcast %cst : f32 to vector<1x128xf32>
    %4 = vector.extract_strided_slice %2 {offsets = [0, 0], sizes = [15, 128], strides = [1, 1]} : vector<16x128xf32> to vector<15x128xf32>
    %5 = tpu.concatenate %3, %4 in 0 : vector<1x128xf32>, vector<15x128xf32> -> vector<16x128xf32>
    %6 = vector.extract_strided_slice %2 {offsets = [1, 0], sizes = [15, 128], strides = [1, 1]} : vector<16x128xf32> to vector<15x128xf32>
    %7 = tpu.concatenate %6, %3 in 0 : vector<15x128xf32>, vector<1x128xf32> -> vector<16x128xf32>
    %8 = tpu.concatenate %5, %2, %7 in 1 : vector<16x128xf32>, vector<16x128xf32>, vector<16x128xf32> -> vector<16x384xf32>
    %9 = arith.truncf %8 : vector<16x384xf32> to vector<16x384xbf16>
    %c0_2 = arith.constant 0 : index
    %c0_3 = arith.constant 0 : index
    %10 = vector.load %arg3[%c0_2, %c0_3] : memref<384x32xbf16, #tpu.memory_space<vmem>>, vector<384x32xbf16>
    %cst_4 = arith.constant dense<0.000000e+00> : vector<16x32xf32>
    %11 = tpu.matmul %9, %10, %cst_4 {dimension_numbers = #tpu.dot_dimension_numbers<[1], [0], [0], [1], [0, 0, 1, 1], [], []>} : vector<16x384xbf16>, vector<384x32xbf16>, vector<16x32xf32> -> vector<16x32xf32>
    %c0_5 = arith.constant 0 : index
    %c0_6 = arith.constant 0 : index
    %c0_7 = arith.constant 0 : index
    %12 = vector.load %arg2[%c0_5, %c0_6, %c0_7] : memref<1x16x128xbf16, #tpu.memory_space<vmem>>, vector<1x16x128xbf16>
    %13 = vector.shape_cast %12 : vector<1x16x128xbf16> to vector<16x128xbf16>
    %14 = arith.extf %13 : vector<16x128xbf16> to vector<16x128xf32>
    %cst_8 = arith.constant 0.000000e+00 : f32
    %15 = vector.broadcast %cst_8 : f32 to vector<1x128xf32>
    %16 = vector.extract_strided_slice %14 {offsets = [0, 0], sizes = [15, 128], strides = [1, 1]} : vector<16x128xf32> to vector<15x128xf32>
    %17 = tpu.concatenate %15, %16 in 0 : vector<1x128xf32>, vector<15x128xf32> -> vector<16x128xf32>
    %18 = vector.extract_strided_slice %14 {offsets = [1, 0], sizes = [15, 128], strides = [1, 1]} : vector<16x128xf32> to vector<15x128xf32>
    %19 = tpu.concatenate %18, %15 in 0 : vector<15x128xf32>, vector<1x128xf32> -> vector<16x128xf32>
    %20 = tpu.concatenate %17, %14, %19 in 1 : vector<16x128xf32>, vector<16x128xf32>, vector<16x128xf32> -> vector<16x384xf32>
    %21 = arith.truncf %20 : vector<16x384xf32> to vector<16x384xbf16>
    %c0_9 = arith.constant 0 : index
    %c0_10 = arith.constant 0 : index
    %22 = vector.load %arg4[%c0_9, %c0_10] : memref<384x32xbf16, #tpu.memory_space<vmem>>, vector<384x32xbf16>
    %cst_11 = arith.constant dense<0.000000e+00> : vector<16x32xf32>
    %23 = tpu.matmul %21, %22, %cst_11 {dimension_numbers = #tpu.dot_dimension_numbers<[1], [0], [0], [1], [0, 0, 1, 1], [], []>} : vector<16x384xbf16>, vector<384x32xbf16>, vector<16x32xf32> -> vector<16x32xf32>
    %24 = arith.addf %11, %23 : vector<16x32xf32>
    %c0_12 = arith.constant 0 : index
    %c0_13 = arith.constant 0 : index
    %25 = vector.load %arg5[%c0_12, %c0_13] : memref<1x32xf32, #tpu.memory_space<vmem>>, vector<1x32xf32>
    %26 = vector.broadcast %25 : vector<1x32xf32> to vector<16x32xf32>
    %27 = arith.addf %24, %26 : vector<16x32xf32>
    %c0_14 = arith.constant 0 : index
    %c0_15 = arith.constant 0 : index
    %c0_16 = arith.constant 0 : index
    %28 = vector.load %arg6[%c0_14, %c0_15, %c0_16] : memref<1x16x32xf32, #tpu.memory_space<vmem>>, vector<1x16x32xf32>
    %29 = vector.shape_cast %28 : vector<1x16x32xf32> to vector<16x32xf32>
    %30 = arith.addf %27, %29 : vector<16x32xf32>
    %c0_17 = arith.constant 0 : index
    %c0_18 = arith.constant 0 : index
    %c0_19 = arith.constant 0 : index
    %31 = vector.load %arg7[%c0_17, %c0_18, %c0_19] : memref<1x16x32xf32, #tpu.memory_space<vmem>>, vector<1x16x32xf32>
    %32 = vector.shape_cast %31 : vector<1x16x32xf32> to vector<16x32xf32>
    %33 = vector.shape_cast %30 : vector<16x32xf32> to vector<1x16x32xf32>
    tpu.vector_store %arg7[%c0_17, %c0_18, %c0_19], %33 {strides = array<i32>} : memref<1x16x32xf32, #tpu.memory_space<vmem>>, vector<1x16x32xf32>,
    return
  }
  func.func @transform_0(%arg0: i32) -> (i32, i32, i32) {
    %c0_i32 = arith.constant 0 : i32
    %c0_i32_0 = arith.constant 0 : i32
    %c0_i32_1 = arith.constant 0 : i32
    return %arg0, %c0_i32, %c0_i32_0 : i32, i32, i32
  }
  func.func @transform_1(%arg0: i32) -> (i32, i32, i32) {
    %c0_i32 = arith.constant 0 : i32
    %c0_i32_0 = arith.constant 0 : i32
    %c0_i32_1 = arith.constant 0 : i32
    return %arg0, %c0_i32, %c0_i32_0 : i32, i32, i32
  }
  func.func @transform_2(%arg0: i32) -> (i32, i32) {
    %c0_i32 = arith.constant 0 : i32
    %c0_i32_0 = arith.constant 0 : i32
    %c0_i32_1 = arith.constant 0 : i32
    return %c0_i32, %c0_i32_0 : i32, i32
  }
  func.func @transform_3(%arg0: i32) -> (i32, i32) {
    %c0_i32 = arith.constant 0 : i32
    %c0_i32_0 = arith.constant 0 : i32
    %c0_i32_1 = arith.constant 0 : i32
    return %c0_i32, %c0_i32_0 : i32, i32
  }
  func.func @transform_4(%arg0: i32) -> (i32, i32) {
    %c0_i32 = arith.constant 0 : i32
    %c0_i32_0 = arith.constant 0 : i32
    %c0_i32_1 = arith.constant 0 : i32
    return %c0_i32, %c0_i32_0 : i32, i32
  }
  func.func @transform_5(%arg0: i32) -> (i32, i32, i32) {
    %c0_i32 = arith.constant 0 : i32
    %c0_i32_0 = arith.constant 0 : i32
    %c0_i32_1 = arith.constant 0 : i32
    return %arg0, %c0_i32, %c0_i32_0 : i32, i32, i32
  }
  func.func @transform_6(%arg0: i32) -> (i32, i32, i32) {
    %c0_i32 = arith.constant 0 : i32
    %c0_i32_0 = arith.constant 0 : i32
    %c0_i32_1 = arith.constant 0 : i32
    return %arg0, %c0_i32, %c0_i32_0 : i32, i32, i32
  }
}

module attributes {stable_mosaic.version = 11 : i64} {
  func.func @_conv1x1_kernel(%arg0: i32, %arg1: memref<32x128xbf16, #tpu.memory_space<vmem>>, %arg2: memref<32x128xbf16, #tpu.memory_space<vmem>>, %arg3: memref<32x128xbf16, #tpu.memory_space<vmem>>, %arg4: memref<128x128xbf16, #tpu.memory_space<vmem>>, %arg5: memref<128x128xbf16, #tpu.memory_space<vmem>>, %arg6: memref<128x128xbf16, #tpu.memory_space<vmem>>, %arg7: memref<1x128xf32, #tpu.memory_space<vmem>>, %arg8: memref<32x128xbf16, #tpu.memory_space<vmem>>) attributes {dimension_semantics = [#tpu.dimension_semantics<parallel>], iteration_bounds = array<i64: 1>, scalar_prefetch = 0 : i64, scratch_operands = 0 : i64, tpu.core_type = #tpu.core_type<tc>, window_params = [{transform_indices = @transform_0, window_bounds = array<i64: 32, 128>}, {transform_indices = @transform_1, window_bounds = array<i64: 32, 128>}, {transform_indices = @transform_2, window_bounds = array<i64: 32, 128>}, {pipeline_mode = #tpu.pipeline_mode<synchronous>, transform_indices = @transform_3, window_bounds = array<i64: 128, 128>}, {pipeline_mode = #tpu.pipeline_mode<synchronous>, transform_indices = @transform_4, window_bounds = array<i64: 128, 128>}, {pipeline_mode = #tpu.pipeline_mode<synchronous>, transform_indices = @transform_5, window_bounds = array<i64: 128, 128>}, {pipeline_mode = #tpu.pipeline_mode<synchronous>, transform_indices = @transform_6, window_bounds = array<i64: 1, 128>}, {transform_indices = @transform_7, window_bounds = array<i64: 32, 128>}]} {
    %c0 = arith.constant 0 : index
    %c0_0 = arith.constant 0 : index
    %0 = vector.load %arg1[%c0, %c0_0] : memref<32x128xbf16, #tpu.memory_space<vmem>>, vector<32x128xbf16>
    %c0_1 = arith.constant 0 : index
    %c0_2 = arith.constant 0 : index
    %1 = vector.load %arg4[%c0_1, %c0_2] : memref<128x128xbf16, #tpu.memory_space<vmem>>, vector<128x128xbf16>
    %cst = arith.constant dense<0.000000e+00> : vector<32x128xf32>
    %2 = tpu.matmul %0, %1, %cst {dimension_numbers = #tpu.dot_dimension_numbers<[1], [0], [0], [1], [0, 0, 1, 1], [], []>} : vector<32x128xbf16>, vector<128x128xbf16>, vector<32x128xf32> -> vector<32x128xf32>
    %c0_3 = arith.constant 0 : index
    %c0_4 = arith.constant 0 : index
    %3 = vector.load %arg2[%c0_3, %c0_4] : memref<32x128xbf16, #tpu.memory_space<vmem>>, vector<32x128xbf16>
    %c0_5 = arith.constant 0 : index
    %c0_6 = arith.constant 0 : index
    %4 = vector.load %arg5[%c0_5, %c0_6] : memref<128x128xbf16, #tpu.memory_space<vmem>>, vector<128x128xbf16>
    %cst_7 = arith.constant dense<0.000000e+00> : vector<32x128xf32>
    %5 = tpu.matmul %3, %4, %cst_7 {dimension_numbers = #tpu.dot_dimension_numbers<[1], [0], [0], [1], [0, 0, 1, 1], [], []>} : vector<32x128xbf16>, vector<128x128xbf16>, vector<32x128xf32> -> vector<32x128xf32>
    %6 = arith.addf %2, %5 : vector<32x128xf32>
    %c0_8 = arith.constant 0 : index
    %c0_9 = arith.constant 0 : index
    %7 = vector.load %arg3[%c0_8, %c0_9] : memref<32x128xbf16, #tpu.memory_space<vmem>>, vector<32x128xbf16>
    %c0_10 = arith.constant 0 : index
    %c0_11 = arith.constant 0 : index
    %8 = vector.load %arg6[%c0_10, %c0_11] : memref<128x128xbf16, #tpu.memory_space<vmem>>, vector<128x128xbf16>
    %cst_12 = arith.constant dense<0.000000e+00> : vector<32x128xf32>
    %9 = tpu.matmul %7, %8, %cst_12 {dimension_numbers = #tpu.dot_dimension_numbers<[1], [0], [0], [1], [0, 0, 1, 1], [], []>} : vector<32x128xbf16>, vector<128x128xbf16>, vector<32x128xf32> -> vector<32x128xf32>
    %10 = arith.addf %6, %9 : vector<32x128xf32>
    %c0_13 = arith.constant 0 : index
    %c0_14 = arith.constant 0 : index
    %11 = vector.load %arg7[%c0_13, %c0_14] : memref<1x128xf32, #tpu.memory_space<vmem>>, vector<1x128xf32>
    %12 = vector.broadcast %11 : vector<1x128xf32> to vector<32x128xf32>
    %13 = arith.addf %10, %12 : vector<32x128xf32>
    %14 = arith.truncf %13 : vector<32x128xf32> to vector<32x128xbf16>
    %c0_15 = arith.constant 0 : index
    %c0_16 = arith.constant 0 : index
    %15 = vector.load %arg8[%c0_15, %c0_16] : memref<32x128xbf16, #tpu.memory_space<vmem>>, vector<32x128xbf16>
    tpu.vector_store %arg8[%c0_15, %c0_16], %14 {strides = array<i32>} : memref<32x128xbf16, #tpu.memory_space<vmem>>, vector<32x128xbf16>,
    return
  }
  func.func @transform_0(%arg0: i32) -> (i32, i32) {
    %c0_i32 = arith.constant 0 : i32
    %c0_i32_0 = arith.constant 0 : i32
    return %arg0, %c0_i32 : i32, i32
  }
  func.func @transform_1(%arg0: i32) -> (i32, i32) {
    %c0_i32 = arith.constant 0 : i32
    %c0_i32_0 = arith.constant 0 : i32
    return %arg0, %c0_i32 : i32, i32
  }
  func.func @transform_2(%arg0: i32) -> (i32, i32) {
    %c0_i32 = arith.constant 0 : i32
    %c0_i32_0 = arith.constant 0 : i32
    return %arg0, %c0_i32 : i32, i32
  }
  func.func @transform_3(%arg0: i32) -> (i32, i32) {
    %c0_i32 = arith.constant 0 : i32
    %c0_i32_0 = arith.constant 0 : i32
    %c0_i32_1 = arith.constant 0 : i32
    return %c0_i32, %c0_i32_0 : i32, i32
  }
  func.func @transform_4(%arg0: i32) -> (i32, i32) {
    %c0_i32 = arith.constant 0 : i32
    %c0_i32_0 = arith.constant 0 : i32
    %c0_i32_1 = arith.constant 0 : i32
    return %c0_i32, %c0_i32_0 : i32, i32
  }
  func.func @transform_5(%arg0: i32) -> (i32, i32) {
    %c0_i32 = arith.constant 0 : i32
    %c0_i32_0 = arith.constant 0 : i32
    %c0_i32_1 = arith.constant 0 : i32
    return %c0_i32, %c0_i32_0 : i32, i32
  }
  func.func @transform_6(%arg0: i32) -> (i32, i32) {
    %c0_i32 = arith.constant 0 : i32
    %c0_i32_0 = arith.constant 0 : i32
    %c0_i32_1 = arith.constant 0 : i32
    return %c0_i32, %c0_i32_0 : i32, i32
  }
  func.func @transform_7(%arg0: i32) -> (i32, i32) {
    %c0_i32 = arith.constant 0 : i32
    %c0_i32_0 = arith.constant 0 : i32
    return %arg0, %c0_i32 : i32, i32
  }
}

module attributes {stable_mosaic.version = 11 : i64} {
  func.func @_upsample_kernel(%arg0: i32, %arg1: memref<1x16x128xbf16, #tpu.memory_space<vmem>>, %arg2: memref<32x16xbf16, #tpu.memory_space<vmem>>, %arg3: memref<128x256xbf16, #tpu.memory_space<vmem>>, %arg4: memref<1x32x256xbf16, #tpu.memory_space<vmem>>) attributes {dimension_semantics = [#tpu.dimension_semantics<parallel>], iteration_bounds = array<i64: 2>, scalar_prefetch = 0 : i64, scratch_operands = 0 : i64, tpu.core_type = #tpu.core_type<tc>, window_params = [{transform_indices = @transform_0, window_bounds = array<i64: 1, 16, 128>}, {pipeline_mode = #tpu.pipeline_mode<synchronous>, transform_indices = @transform_1, window_bounds = array<i64: 32, 16>}, {pipeline_mode = #tpu.pipeline_mode<synchronous>, transform_indices = @transform_2, window_bounds = array<i64: 128, 256>}, {transform_indices = @transform_3, window_bounds = array<i64: 1, 32, 256>}]} {
    %c0 = arith.constant 0 : index
    %c0_0 = arith.constant 0 : index
    %0 = vector.load %arg2[%c0, %c0_0] : memref<32x16xbf16, #tpu.memory_space<vmem>>, vector<32x16xbf16>
    %c0_1 = arith.constant 0 : index
    %c0_2 = arith.constant 0 : index
    %c0_3 = arith.constant 0 : index
    %1 = vector.load %arg1[%c0_1, %c0_2, %c0_3] : memref<1x16x128xbf16, #tpu.memory_space<vmem>>, vector<1x16x128xbf16>
    %2 = vector.shape_cast %1 : vector<1x16x128xbf16> to vector<16x128xbf16>
    %cst = arith.constant dense<0.000000e+00> : vector<32x128xf32>
    %3 = tpu.matmul %0, %2, %cst {dimension_numbers = #tpu.dot_dimension_numbers<[1], [0], [0], [1], [0, 0, 1, 1], [], []>} : vector<32x16xbf16>, vector<16x128xbf16>, vector<32x128xf32> -> vector<32x128xf32>
    %4 = arith.truncf %3 : vector<32x128xf32> to vector<32x128xbf16>
    %c0_4 = arith.constant 0 : index
    %c0_5 = arith.constant 0 : index
    %5 = vector.load %arg3[%c0_4, %c0_5] : memref<128x256xbf16, #tpu.memory_space<vmem>>, vector<128x256xbf16>
    %cst_6 = arith.constant dense<0.000000e+00> : vector<32x256xf32>
    %6 = tpu.matmul %4, %5, %cst_6 {dimension_numbers = #tpu.dot_dimension_numbers<[1], [0], [0], [1], [0, 0, 1, 1], [], []>} : vector<32x128xbf16>, vector<128x256xbf16>, vector<32x256xf32> -> vector<32x256xf32>
    %7 = arith.truncf %6 : vector<32x256xf32> to vector<32x256xbf16>
    %c0_7 = arith.constant 0 : index
    %c0_8 = arith.constant 0 : index
    %c0_9 = arith.constant 0 : index
    %8 = vector.load %arg4[%c0_7, %c0_8, %c0_9] : memref<1x32x256xbf16, #tpu.memory_space<vmem>>, vector<1x32x256xbf16>
    %9 = vector.shape_cast %8 : vector<1x32x256xbf16> to vector<32x256xbf16>
    %10 = vector.shape_cast %7 : vector<32x256xbf16> to vector<1x32x256xbf16>
    tpu.vector_store %arg4[%c0_7, %c0_8, %c0_9], %10 {strides = array<i32>} : memref<1x32x256xbf16, #tpu.memory_space<vmem>>, vector<1x32x256xbf16>,
    return
  }
  func.func @transform_0(%arg0: i32) -> (i32, i32, i32) {
    %c0_i32 = arith.constant 0 : i32
    %c0_i32_0 = arith.constant 0 : i32
    %c0_i32_1 = arith.constant 0 : i32
    return %arg0, %c0_i32, %c0_i32_0 : i32, i32, i32
  }
  func.func @transform_1(%arg0: i32) -> (i32, i32) {
    %c0_i32 = arith.constant 0 : i32
    %c0_i32_0 = arith.constant 0 : i32
    %c0_i32_1 = arith.constant 0 : i32
    return %c0_i32, %c0_i32_0 : i32, i32
  }
  func.func @transform_2(%arg0: i32) -> (i32, i32) {
    %c0_i32 = arith.constant 0 : i32
    %c0_i32_0 = arith.constant 0 : i32
    %c0_i32_1 = arith.constant 0 : i32
    return %c0_i32, %c0_i32_0 : i32, i32
  }
  func.func @transform_3(%arg0: i32) -> (i32, i32, i32) {
    %c0_i32 = arith.constant 0 : i32
    %c0_i32_0 = arith.constant 0 : i32
    %c0_i32_1 = arith.constant 0 : i32
    return %arg0, %c0_i32, %c0_i32_0 : i32, i32, i32
  }
}

module attributes {stable_mosaic.version = 11 : i64} {
  func.func @_conv3x3_kernel(%arg0: i32, %arg1: memref<1x32x256xbf16, #tpu.memory_space<vmem>>, %arg2: memref<768x256xbf16, #tpu.memory_space<vmem>>, %arg3: memref<1x32x256xbf16, #tpu.memory_space<vmem>>, %arg4: memref<1x2x256xf32, #tpu.memory_space<vmem>>) attributes {dimension_semantics = [#tpu.dimension_semantics<parallel>], iteration_bounds = array<i64: 2>, scalar_prefetch = 0 : i64, scratch_operands = 0 : i64, tpu.core_type = #tpu.core_type<tc>, window_params = [{transform_indices = @transform_0, window_bounds = array<i64: 1, 32, 256>}, {pipeline_mode = #tpu.pipeline_mode<synchronous>, transform_indices = @transform_1, window_bounds = array<i64: 768, 256>}, {transform_indices = @transform_2, window_bounds = array<i64: 1, 32, 256>}, {transform_indices = @transform_3, window_bounds = array<i64: 1, 2, 256>}]} {
    %c0 = arith.constant 0 : index
    %c0_0 = arith.constant 0 : index
    %c0_1 = arith.constant 0 : index
    %0 = vector.load %arg1[%c0, %c0_0, %c0_1] : memref<1x32x256xbf16, #tpu.memory_space<vmem>>, vector<1x32x256xbf16>
    %1 = vector.shape_cast %0 : vector<1x32x256xbf16> to vector<32x256xbf16>
    %2 = arith.extf %1 : vector<32x256xbf16> to vector<32x256xf32>
    %cst = arith.constant 0.000000e+00 : f32
    %3 = vector.broadcast %cst : f32 to vector<1x256xf32>
    %4 = vector.extract_strided_slice %2 {offsets = [0, 0], sizes = [31, 256], strides = [1, 1]} : vector<32x256xf32> to vector<31x256xf32>
    %5 = tpu.concatenate %3, %4 in 0 : vector<1x256xf32>, vector<31x256xf32> -> vector<32x256xf32>
    %6 = vector.extract_strided_slice %2 {offsets = [1, 0], sizes = [31, 256], strides = [1, 1]} : vector<32x256xf32> to vector<31x256xf32>
    %7 = tpu.concatenate %6, %3 in 0 : vector<31x256xf32>, vector<1x256xf32> -> vector<32x256xf32>
    %8 = tpu.concatenate %5, %2, %7 in 1 : vector<32x256xf32>, vector<32x256xf32>, vector<32x256xf32> -> vector<32x768xf32>
    %9 = arith.truncf %8 : vector<32x768xf32> to vector<32x768xbf16>
    %c0_2 = arith.constant 0 : index
    %c0_3 = arith.constant 0 : index
    %10 = vector.load %arg2[%c0_2, %c0_3] : memref<768x256xbf16, #tpu.memory_space<vmem>>, vector<768x256xbf16>
    %cst_4 = arith.constant dense<0.000000e+00> : vector<32x256xf32>
    %11 = tpu.matmul %9, %10, %cst_4 {dimension_numbers = #tpu.dot_dimension_numbers<[1], [0], [0], [1], [0, 0, 1, 1], [], []>} : vector<32x768xbf16>, vector<768x256xbf16>, vector<32x256xf32> -> vector<32x256xf32>
    %cst_5 = arith.constant dense<0.000000e+00> : vector<256xf32>
    %12 = vector.multi_reduction <add>, %11, %cst_5 [0] : vector<32x256xf32> to vector<256xf32>
    %13 = vector.shape_cast %12 : vector<256xf32> to vector<1x256xf32>
    %14 = arith.mulf %11, %11 : vector<32x256xf32>
    %cst_6 = arith.constant dense<0.000000e+00> : vector<256xf32>
    %15 = vector.multi_reduction <add>, %14, %cst_6 [0] : vector<32x256xf32> to vector<256xf32>
    %16 = vector.shape_cast %15 : vector<256xf32> to vector<1x256xf32>
    %17 = tpu.concatenate %13, %16 in 0 : vector<1x256xf32>, vector<1x256xf32> -> vector<2x256xf32>
    %c0_7 = arith.constant 0 : index
    %c0_8 = arith.constant 0 : index
    %c0_9 = arith.constant 0 : index
    %18 = vector.load %arg4[%c0_7, %c0_8, %c0_9] : memref<1x2x256xf32, #tpu.memory_space<vmem>>, vector<1x2x256xf32>
    %19 = vector.shape_cast %18 : vector<1x2x256xf32> to vector<2x256xf32>
    %20 = vector.shape_cast %17 : vector<2x256xf32> to vector<1x2x256xf32>
    tpu.vector_store %arg4[%c0_7, %c0_8, %c0_9], %20 {strides = array<i32>} : memref<1x2x256xf32, #tpu.memory_space<vmem>>, vector<1x2x256xf32>,
    %21 = arith.truncf %11 : vector<32x256xf32> to vector<32x256xbf16>
    %c0_10 = arith.constant 0 : index
    %c0_11 = arith.constant 0 : index
    %c0_12 = arith.constant 0 : index
    %22 = vector.load %arg3[%c0_10, %c0_11, %c0_12] : memref<1x32x256xbf16, #tpu.memory_space<vmem>>, vector<1x32x256xbf16>
    %23 = vector.shape_cast %22 : vector<1x32x256xbf16> to vector<32x256xbf16>
    %24 = vector.shape_cast %21 : vector<32x256xbf16> to vector<1x32x256xbf16>
    tpu.vector_store %arg3[%c0_10, %c0_11, %c0_12], %24 {strides = array<i32>} : memref<1x32x256xbf16, #tpu.memory_space<vmem>>, vector<1x32x256xbf16>,
    return
  }
  func.func @transform_0(%arg0: i32) -> (i32, i32, i32) {
    %c0_i32 = arith.constant 0 : i32
    %c0_i32_0 = arith.constant 0 : i32
    %c0_i32_1 = arith.constant 0 : i32
    return %arg0, %c0_i32, %c0_i32_0 : i32, i32, i32
  }
  func.func @transform_1(%arg0: i32) -> (i32, i32) {
    %c0_i32 = arith.constant 0 : i32
    %c0_i32_0 = arith.constant 0 : i32
    %c0_i32_1 = arith.constant 0 : i32
    return %c0_i32, %c0_i32_0 : i32, i32
  }
  func.func @transform_2(%arg0: i32) -> (i32, i32, i32) {
    %c0_i32 = arith.constant 0 : i32
    %c0_i32_0 = arith.constant 0 : i32
    %c0_i32_1 = arith.constant 0 : i32
    return %arg0, %c0_i32, %c0_i32_0 : i32, i32, i32
  }
  func.func @transform_3(%arg0: i32) -> (i32, i32, i32) {
    %c0_i32 = arith.constant 0 : i32
    %c0_i32_0 = arith.constant 0 : i32
    %c0_i32_1 = arith.constant 0 : i32
    return %arg0, %c0_i32, %c0_i32_0 : i32, i32, i32
  }
}

module attributes {stable_mosaic.version = 11 : i64} {
  func.func @_conv3x3_kernel(%arg0: i32, %arg1: memref<1x32x256xbf16, #tpu.memory_space<vmem>>, %arg2: memref<768x256xbf16, #tpu.memory_space<vmem>>, %arg3: memref<1x256xf32, #tpu.memory_space<vmem>>, %arg4: memref<1x256xf32, #tpu.memory_space<vmem>>, %arg5: memref<1x32x256xbf16, #tpu.memory_space<vmem>>, %arg6: memref<1x2x256xf32, #tpu.memory_space<vmem>>) attributes {dimension_semantics = [#tpu.dimension_semantics<parallel>], iteration_bounds = array<i64: 2>, scalar_prefetch = 0 : i64, scratch_operands = 0 : i64, tpu.core_type = #tpu.core_type<tc>, window_params = [{transform_indices = @transform_0, window_bounds = array<i64: 1, 32, 256>}, {pipeline_mode = #tpu.pipeline_mode<synchronous>, transform_indices = @transform_1, window_bounds = array<i64: 768, 256>}, {pipeline_mode = #tpu.pipeline_mode<synchronous>, transform_indices = @transform_2, window_bounds = array<i64: 1, 256>}, {pipeline_mode = #tpu.pipeline_mode<synchronous>, transform_indices = @transform_3, window_bounds = array<i64: 1, 256>}, {transform_indices = @transform_4, window_bounds = array<i64: 1, 32, 256>}, {transform_indices = @transform_5, window_bounds = array<i64: 1, 2, 256>}]} {
    %c0 = arith.constant 0 : index
    %c0_0 = arith.constant 0 : index
    %c0_1 = arith.constant 0 : index
    %0 = vector.load %arg1[%c0, %c0_0, %c0_1] : memref<1x32x256xbf16, #tpu.memory_space<vmem>>, vector<1x32x256xbf16>
    %1 = vector.shape_cast %0 : vector<1x32x256xbf16> to vector<32x256xbf16>
    %2 = arith.extf %1 : vector<32x256xbf16> to vector<32x256xf32>
    %c0_2 = arith.constant 0 : index
    %c0_3 = arith.constant 0 : index
    %3 = vector.load %arg3[%c0_2, %c0_3] : memref<1x256xf32, #tpu.memory_space<vmem>>, vector<1x256xf32>
    %4 = vector.broadcast %3 : vector<1x256xf32> to vector<32x256xf32>
    %5 = arith.mulf %2, %4 : vector<32x256xf32>
    %c0_4 = arith.constant 0 : index
    %c0_5 = arith.constant 0 : index
    %6 = vector.load %arg4[%c0_4, %c0_5] : memref<1x256xf32, #tpu.memory_space<vmem>>, vector<1x256xf32>
    %7 = vector.broadcast %6 : vector<1x256xf32> to vector<32x256xf32>
    %8 = arith.addf %5, %7 : vector<32x256xf32>
    %cst = arith.constant 0.000000e+00 : f32
    %9 = vector.broadcast %cst : f32 to vector<32x256xf32>
    %10 = arith.maximumf %8, %9 : vector<32x256xf32>
    %cst_6 = arith.constant 0.000000e+00 : f32
    %11 = vector.broadcast %cst_6 : f32 to vector<1x256xf32>
    %12 = vector.extract_strided_slice %10 {offsets = [0, 0], sizes = [31, 256], strides = [1, 1]} : vector<32x256xf32> to vector<31x256xf32>
    %13 = tpu.concatenate %11, %12 in 0 : vector<1x256xf32>, vector<31x256xf32> -> vector<32x256xf32>
    %14 = vector.extract_strided_slice %10 {offsets = [1, 0], sizes = [31, 256], strides = [1, 1]} : vector<32x256xf32> to vector<31x256xf32>
    %15 = tpu.concatenate %14, %11 in 0 : vector<31x256xf32>, vector<1x256xf32> -> vector<32x256xf32>
    %16 = tpu.concatenate %13, %10, %15 in 1 : vector<32x256xf32>, vector<32x256xf32>, vector<32x256xf32> -> vector<32x768xf32>
    %17 = arith.truncf %16 : vector<32x768xf32> to vector<32x768xbf16>
    %c0_7 = arith.constant 0 : index
    %c0_8 = arith.constant 0 : index
    %18 = vector.load %arg2[%c0_7, %c0_8] : memref<768x256xbf16, #tpu.memory_space<vmem>>, vector<768x256xbf16>
    %cst_9 = arith.constant dense<0.000000e+00> : vector<32x256xf32>
    %19 = tpu.matmul %17, %18, %cst_9 {dimension_numbers = #tpu.dot_dimension_numbers<[1], [0], [0], [1], [0, 0, 1, 1], [], []>} : vector<32x768xbf16>, vector<768x256xbf16>, vector<32x256xf32> -> vector<32x256xf32>
    %cst_10 = arith.constant dense<0.000000e+00> : vector<256xf32>
    %20 = vector.multi_reduction <add>, %19, %cst_10 [0] : vector<32x256xf32> to vector<256xf32>
    %21 = vector.shape_cast %20 : vector<256xf32> to vector<1x256xf32>
    %22 = arith.mulf %19, %19 : vector<32x256xf32>
    %cst_11 = arith.constant dense<0.000000e+00> : vector<256xf32>
    %23 = vector.multi_reduction <add>, %22, %cst_11 [0] : vector<32x256xf32> to vector<256xf32>
    %24 = vector.shape_cast %23 : vector<256xf32> to vector<1x256xf32>
    %25 = tpu.concatenate %21, %24 in 0 : vector<1x256xf32>, vector<1x256xf32> -> vector<2x256xf32>
    %c0_12 = arith.constant 0 : index
    %c0_13 = arith.constant 0 : index
    %c0_14 = arith.constant 0 : index
    %26 = vector.load %arg6[%c0_12, %c0_13, %c0_14] : memref<1x2x256xf32, #tpu.memory_space<vmem>>, vector<1x2x256xf32>
    %27 = vector.shape_cast %26 : vector<1x2x256xf32> to vector<2x256xf32>
    %28 = vector.shape_cast %25 : vector<2x256xf32> to vector<1x2x256xf32>
    tpu.vector_store %arg6[%c0_12, %c0_13, %c0_14], %28 {strides = array<i32>} : memref<1x2x256xf32, #tpu.memory_space<vmem>>, vector<1x2x256xf32>,
    %29 = arith.truncf %19 : vector<32x256xf32> to vector<32x256xbf16>
    %c0_15 = arith.constant 0 : index
    %c0_16 = arith.constant 0 : index
    %c0_17 = arith.constant 0 : index
    %30 = vector.load %arg5[%c0_15, %c0_16, %c0_17] : memref<1x32x256xbf16, #tpu.memory_space<vmem>>, vector<1x32x256xbf16>
    %31 = vector.shape_cast %30 : vector<1x32x256xbf16> to vector<32x256xbf16>
    %32 = vector.shape_cast %29 : vector<32x256xbf16> to vector<1x32x256xbf16>
    tpu.vector_store %arg5[%c0_15, %c0_16, %c0_17], %32 {strides = array<i32>} : memref<1x32x256xbf16, #tpu.memory_space<vmem>>, vector<1x32x256xbf16>,
    return
  }
  func.func @transform_0(%arg0: i32) -> (i32, i32, i32) {
    %c0_i32 = arith.constant 0 : i32
    %c0_i32_0 = arith.constant 0 : i32
    %c0_i32_1 = arith.constant 0 : i32
    return %arg0, %c0_i32, %c0_i32_0 : i32, i32, i32
  }
  func.func @transform_1(%arg0: i32) -> (i32, i32) {
    %c0_i32 = arith.constant 0 : i32
    %c0_i32_0 = arith.constant 0 : i32
    %c0_i32_1 = arith.constant 0 : i32
    return %c0_i32, %c0_i32_0 : i32, i32
  }
  func.func @transform_2(%arg0: i32) -> (i32, i32) {
    %c0_i32 = arith.constant 0 : i32
    %c0_i32_0 = arith.constant 0 : i32
    %c0_i32_1 = arith.constant 0 : i32
    return %c0_i32, %c0_i32_0 : i32, i32
  }
  func.func @transform_3(%arg0: i32) -> (i32, i32) {
    %c0_i32 = arith.constant 0 : i32
    %c0_i32_0 = arith.constant 0 : i32
    %c0_i32_1 = arith.constant 0 : i32
    return %c0_i32, %c0_i32_0 : i32, i32
  }
  func.func @transform_4(%arg0: i32) -> (i32, i32, i32) {
    %c0_i32 = arith.constant 0 : i32
    %c0_i32_0 = arith.constant 0 : i32
    %c0_i32_1 = arith.constant 0 : i32
    return %arg0, %c0_i32, %c0_i32_0 : i32, i32, i32
  }
  func.func @transform_5(%arg0: i32) -> (i32, i32, i32) {
    %c0_i32 = arith.constant 0 : i32
    %c0_i32_0 = arith.constant 0 : i32
    %c0_i32_1 = arith.constant 0 : i32
    return %arg0, %c0_i32, %c0_i32_0 : i32, i32, i32
  }
}

module attributes {stable_mosaic.version = 11 : i64} {
  func.func @_affine_kernel(%arg0: i32, %arg1: memref<64x256xbf16, #tpu.memory_space<vmem>>, %arg2: memref<1x256xf32, #tpu.memory_space<vmem>>, %arg3: memref<1x256xf32, #tpu.memory_space<vmem>>, %arg4: memref<64x256xbf16, #tpu.memory_space<vmem>>, %arg5: memref<64x256xf32, #tpu.memory_space<vmem>>) attributes {dimension_semantics = [#tpu.dimension_semantics<parallel>], iteration_bounds = array<i64: 1>, scalar_prefetch = 0 : i64, scratch_operands = 0 : i64, tpu.core_type = #tpu.core_type<tc>, window_params = [{transform_indices = @transform_0, window_bounds = array<i64: 64, 256>}, {pipeline_mode = #tpu.pipeline_mode<synchronous>, transform_indices = @transform_1, window_bounds = array<i64: 1, 256>}, {pipeline_mode = #tpu.pipeline_mode<synchronous>, transform_indices = @transform_2, window_bounds = array<i64: 1, 256>}, {transform_indices = @transform_3, window_bounds = array<i64: 64, 256>}, {transform_indices = @transform_4, window_bounds = array<i64: 64, 256>}]} {
    %c0 = arith.constant 0 : index
    %c0_0 = arith.constant 0 : index
    %0 = vector.load %arg1[%c0, %c0_0] : memref<64x256xbf16, #tpu.memory_space<vmem>>, vector<64x256xbf16>
    %1 = arith.extf %0 : vector<64x256xbf16> to vector<64x256xf32>
    %c0_1 = arith.constant 0 : index
    %c0_2 = arith.constant 0 : index
    %2 = vector.load %arg2[%c0_1, %c0_2] : memref<1x256xf32, #tpu.memory_space<vmem>>, vector<1x256xf32>
    %3 = vector.broadcast %2 : vector<1x256xf32> to vector<64x256xf32>
    %4 = arith.mulf %1, %3 : vector<64x256xf32>
    %c0_3 = arith.constant 0 : index
    %c0_4 = arith.constant 0 : index
    %5 = vector.load %arg3[%c0_3, %c0_4] : memref<1x256xf32, #tpu.memory_space<vmem>>, vector<1x256xf32>
    %6 = vector.broadcast %5 : vector<1x256xf32> to vector<64x256xf32>
    %7 = arith.addf %4, %6 : vector<64x256xf32>
    %c0_5 = arith.constant 0 : index
    %c0_6 = arith.constant 0 : index
    %8 = vector.load %arg4[%c0_5, %c0_6] : memref<64x256xbf16, #tpu.memory_space<vmem>>, vector<64x256xbf16>
    %9 = arith.extf %8 : vector<64x256xbf16> to vector<64x256xf32>
    %10 = arith.addf %7, %9 : vector<64x256xf32>
    %cst = arith.constant 0.000000e+00 : f32
    %11 = vector.broadcast %cst : f32 to vector<64x256xf32>
    %12 = arith.maximumf %10, %11 : vector<64x256xf32>
    %c0_7 = arith.constant 0 : index
    %c0_8 = arith.constant 0 : index
    %13 = vector.load %arg5[%c0_7, %c0_8] : memref<64x256xf32, #tpu.memory_space<vmem>>, vector<64x256xf32>
    tpu.vector_store %arg5[%c0_7, %c0_8], %12 {strides = array<i32>} : memref<64x256xf32, #tpu.memory_space<vmem>>, vector<64x256xf32>,
    return
  }
  func.func @transform_0(%arg0: i32) -> (i32, i32) {
    %c0_i32 = arith.constant 0 : i32
    %c0_i32_0 = arith.constant 0 : i32
    return %arg0, %c0_i32 : i32, i32
  }
  func.func @transform_1(%arg0: i32) -> (i32, i32) {
    %c0_i32 = arith.constant 0 : i32
    %c0_i32_0 = arith.constant 0 : i32
    %c0_i32_1 = arith.constant 0 : i32
    return %c0_i32, %c0_i32_0 : i32, i32
  }
  func.func @transform_2(%arg0: i32) -> (i32, i32) {
    %c0_i32 = arith.constant 0 : i32
    %c0_i32_0 = arith.constant 0 : i32
    %c0_i32_1 = arith.constant 0 : i32
    return %c0_i32, %c0_i32_0 : i32, i32
  }
  func.func @transform_3(%arg0: i32) -> (i32, i32) {
    %c0_i32 = arith.constant 0 : i32
    %c0_i32_0 = arith.constant 0 : i32
    return %arg0, %c0_i32 : i32, i32
  }
  func.func @transform_4(%arg0: i32) -> (i32, i32) {
    %c0_i32 = arith.constant 0 : i32
    %c0_i32_0 = arith.constant 0 : i32
    return %arg0, %c0_i32 : i32, i32
  }
}

</mosaic_0001>

<bundles_post_ra>
// kernel: tile.43
= control target key start
LH: loop header
LB: loop body
LE: loop exit
PB: predicated region body
PF: predicated region fallthrough
CT: control target
= control target key end

     0   :  { %2 = vsyncpa [#allocation1], 0  ;;  %s47_s6 = smov [#allocation0]   ;;  %s76_s0 = inlined_call_operand.hbm [shape: f32[8], index: 0, kind: input, shape index: {}]   ;;  %s77_s1 = inlined_call_operand.vmem [shape: f32[16,8], index: 1, kind: output, shape index: {}]  }
   0x1   :  { %s9_s7 = sshll.u32 %s47_s6, 4  ;;  %s23_s10 = scalar_lea.hbm %s76_s0, 16  ;;  %s10_s7 = int_to_ptr.vmem [resolvable:$true] %s9_s7 }
   0x2   :  { %p24_p0 = scmp.ne.s32.totalorder %s76_s0, %s23_s10  ;;  %p27_p1 = scmp.lt.u32.totalorder %s23_s10, %s76_s0 }
   0x4   :  { %p29_p2 = pnand %p27_p1, %p24_p0 }
   0x6   :  { %32 = shalt.err (!%p29_p2)
}
   0x7   :  { %s33_s15 = scalar_lea.vmem %s10_s7, 16  ;;  %s37_s16 = scalar_lea.vmem %s10_s7, 32 }
   0x8   :  { %p34_p3 = scmp.ne.s32.totalorder %s10_s7, %s33_s15  ;;  %p38_p4 = scmp.lt.s32.totalorder %s10_s7, %s10_s7 }
   0x9   :  { %p39_p5 = scmp.lt.s32.totalorder %s37_s16, %s33_s15 }
   0xb   :  { %p40_p6 = por %p39_p5, %p38_p4 }
   0xd   :  { %p41_p7 = pnand %p40_p6, %p34_p3 }
   0xf   :  { %44 = shalt.err (!%p41_p7)
}
  0x10   :  { %12 = dma.hbm_to_vmem [thread:$0]  %s76_s0, 16, %s10_s7, [#allocation1]  }
  0x11   :  { %45 = dma.done.wait [#allocation1], 16  }
  0x12   :  { %46 = vsyncadd [#allocation1], 4294967280  ;;  %v16_v0 = vld [vmem:[#allocation0] ss:$0 sm:$0xff] }
  0x13   :  { %17 = vst [vmem:[%s77_s1] sm:$0xff] %v16_v0  ;;  %21 = vst [vmem:[%s77_s1 + $0x8] sm:$0xff] %v16_v0 }
  0x14   :  { %20 = vsyncpa [#allocation1], 1 }

// kernel: tile.44
= control target key start
LH: loop header
LB: loop body
LE: loop exit
PB: predicated region body
PF: predicated region fallthrough
CT: control target
= control target key end

     0   :  { %s131_s10 = smov 120   ;;  %s132_s11 = smov 104   ;;  %vm3_vm0 = vcmask 64512   ;;  %vm9_vm1 = vcmask 1048512   ;;  %vm15_vm2 = vcmask 982912   ;;  %vm21_vm3 = vcmask 917312   ;;  %s207_s0 = inlined_call_operand.vmem [shape: f32[16,8], index: 0, kind: input, shape index: {}]   ;;  %s208_s1 = inlined_call_operand.vmem [shape: f32[1,128], index: 1, kind: output, shape index: {}]  }
   0x1   :  { %v101_v0 = vld [vmem:[%s207_s0 + $0xf] sm:$0x1]   ;;  %v103_v1 = vld [vmem:[%s207_s0 + $0xd] sm:$0x1]   ;;  %v102_v2 = vld [vmem:[%s207_s0 + $0xe] sm:$0x1]  }
   0x2   :  { %7 = vrot.lane.b32.xlu0 %v101_v0, %s131_s10  ;;  %19 = vrot.lane.b32.xlu1 %v103_v1, %s132_s11  ;;  %v104_v3 = vld [vmem:[%s207_s0 + $0xc] sm:$0x1]   ;;  %s133_s16 = smov 112   ;;  %s134_s17 = smov 96   ;;  %v105_v4 = vld [vmem:[%s207_s0 + $0xb] sm:$0x1]  }
   0x3   :  { %v106_v5 = vld [vmem:[%s207_s0 + $0xa] sm:$0x1]   ;;  %v2_v6 = vld [vmem:[%s207_s0] sm:$0x1]   ;;  %s135_s24 = smov 88   ;;  %s136_s25 = smov 80  }
   0x4   :  { %4 = vst.msk [vmem:[#allocation0] sm:$0x1] %vm3_vm0, %v2_v6   ;;  %v107_v7 = vld [vmem:[%s207_s0 + $0x9] sm:$0x1]   ;;  %v108_v8 = vld [vmem:[%s207_s0 + $0x8] sm:$0x1]  }
   0x5   :  { %s137_s30 = smov 72   ;;  %s138_s2 = smov 64   ;;  %v109_v9 = vld [vmem:[%s207_s0 + $0x7] sm:$0x1]   ;;  %v110_v10 = vld [vmem:[%s207_s0 + $0x6] sm:$0x1]  }
   0x6   :  { %13 = vrot.lane.b32.xlu0 %v102_v2, %s133_s16  ;;  %25 = vrot.lane.b32.xlu1 %v104_v3, %s134_s17  ;;  %s139_s7 = smov 56   ;;  %s140_s8 = smov 48   ;;  %v111_v11 = vld [vmem:[%s207_s0 + $0x5] sm:$0x1]   ;;  %v112_v12 = vld [vmem:[%s207_s0 + $0x4] sm:$0x1]  }
   0x7   :  { %s141_s13 = smov 40   ;;  %s142_s14 = smov 32   ;;  %v113_v13 = vld [vmem:[%s207_s0 + $0x3] sm:$0x1]   ;;  %v114_v14 = vld [vmem:[%s207_s0 + $0x2] sm:$0x1]  }
   0x8   :  { %s143_s19 = smov 24   ;;  %s144_s20 = smov 16   ;;  %v115_v15 = vld [vmem:[%s207_s0 + $0x1] sm:$0x1]   ;;  %vm27_vm4 = vcmask 851712   ;;  %vm33_vm5 = vcmask 786112  }
   0x9   :  { %s145_s0 = smov 8   ;;  %vm39_vm6 = vcmask 720512   ;;  %vm45_vm7 = vcmask 654912   ;;  %vm51_vm8 = vcmask 589312   ;;  %vm57_vm9 = vcmask 523712  }
   0xa   :  { %31 = vrot.lane.b32.xlu0 %v105_v4, %s135_s24  ;;  %37 = vrot.lane.b32.xlu1 %v106_v5, %s136_s25  ;;  %vm63_vm10 = vcmask 458112   ;;  %vm69_vm11 = vcmask 392512   ;;  %vm75_vm12 = vcmask 326912   ;;  %vm81_vm13 = vcmask 261312  }
   0xb   :  { %vm87_vm14 = vcmask 195712   ;;  %vm93_vm15 = vcmask 130112  }
   0xe   :  { %43 = vrot.lane.b32.xlu0 %v107_v7, %s137_s30  ;;  %49 = vrot.lane.b32.xlu1 %v108_v8, %s138_s2 }
  0x12   :  { %55 = vrot.lane.b32.xlu0 %v109_v9, %s139_s7  ;;  %61 = vrot.lane.b32.xlu1 %v110_v10, %s140_s8 }
  0x16   :  { %67 = vrot.lane.b32.xlu0 %v111_v11, %s141_s13  ;;  %73 = vrot.lane.b32.xlu1 %v112_v12, %s142_s14 }
  0x1a   :  { %79 = vrot.lane.b32.xlu0 %v113_v13, %s143_s19  ;;  %85 = vrot.lane.b32.xlu1 %v114_v14, %s144_s20 }
  0x1e   :  { %91 = vrot.lane.b32.xlu0 %v115_v15, %s145_s0 }
  0x74   :  { %v8_v16 = vpop.permute.xlu0 %7   ;;  %v20_v17 = vpop.permute.xlu1 %19  }
  0x75   :  { %10 = vst.msk [vmem:[#allocation0] sm:$0x1] %vm9_vm1, %v8_v16  }
  0x78   :  { %v14_v18 = vpop.permute.xlu0 %13   ;;  %v26_v19 = vpop.permute.xlu1 %25  }
  0x79   :  { %16 = vst.msk [vmem:[#allocation0] sm:$0x1] %vm15_vm2, %v14_v18  }
  0x7a   :  { %22 = vst.msk [vmem:[#allocation0] sm:$0x1] %vm21_vm3, %v20_v17  }
  0x7b   :  { %28 = vst.msk [vmem:[#allocation0] sm:$0x1] %vm27_vm4, %v26_v19  }
  0x7c   :  { %v32_v20 = vpop.permute.xlu0 %31   ;;  %v38_v21 = vpop.permute.xlu1 %37  }
  0x7d   :  { %34 = vst.msk [vmem:[#allocation0] sm:$0x1] %vm33_vm5, %v32_v20  }
  0x7e   :  { %40 = vst.msk [vmem:[#allocation0] sm:$0x1] %vm39_vm6, %v38_v21  }
  0x80   :  { %v44_v22 = vpop.permute.xlu0 %43   ;;  %v50_v23 = vpop.permute.xlu1 %49  }
  0x81   :  { %46 = vst.msk [vmem:[#allocation0] sm:$0x1] %vm45_vm7, %v44_v22  }
  0x82   :  { %52 = vst.msk [vmem:[#allocation0] sm:$0x1] %vm51_vm8, %v50_v23  }
  0x84   :  { %v56_v24 = vpop.permute.xlu0 %55   ;;  %v62_v25 = vpop.permute.xlu1 %61  }
  0x85   :  { %58 = vst.msk [vmem:[#allocation0] sm:$0x1] %vm57_vm9, %v56_v24  }
  0x86   :  { %64 = vst.msk [vmem:[#allocation0] sm:$0x1] %vm63_vm10, %v62_v25  }
  0x88   :  { %v68_v26 = vpop.permute.xlu0 %67   ;;  %v74_v27 = vpop.permute.xlu1 %73  }
  0x89   :  { %70 = vst.msk [vmem:[#allocation0] sm:$0x1] %vm69_vm11, %v68_v26  }
  0x8a   :  { %76 = vst.msk [vmem:[#allocation0] sm:$0x1] %vm75_vm12, %v74_v27  }
  0x8c   :  { %v80_v28 = vpop.permute.xlu0 %79   ;;  %v86_v29 = vpop.permute.xlu1 %85  }
  0x8d   :  { %82 = vst.msk [vmem:[#allocation0] sm:$0x1] %vm81_vm13, %v80_v28  }
  0x8e   :  { %88 = vst.msk [vmem:[#allocation0] sm:$0x1] %vm87_vm14, %v86_v29  }
  0x90   :  { %v92_v30 = vpop.permute.xlu0 %91  }
  0x91   :  { %94 = vst.msk [vmem:[#allocation0] sm:$0x1] %vm93_vm15, %v92_v30  }
  0x98   :  { %v98_v31 = vld [vmem:[#allocation0] sm:$0x1] }
  0x99   :  { %100 = vst [vmem:[%s208_s1] sm:$0x1] %v98_v31 }

// kernel: tile.48
= control target key start
LH: loop header
LB: loop body
LE: loop exit
PB: predicated region body
PF: predicated region fallthrough
CT: control target
= control target key end

     0   :  { %s28_s0 = inlined_call_operand.vmem [shape: f32[8], index: 0, kind: input, shape index: {}]   ;;  %s29_s1 = inlined_call_operand.vmem [shape: f32[16,8], index: 1, kind: output, shape index: {}]  }
   0x1   :  { %v4_v0 = vld [vmem:[%s28_s0] ss:$0 sm:$0xff] }
   0x2   :  { %5 = vst [vmem:[%s29_s1] sm:$0xff] %v4_v0  ;;  %8 = vst [vmem:[%s29_s1 + $0x8] sm:$0xff] %v4_v0 }

// kernel: tile.53
= control target key start
LH: loop header
LB: loop body
LE: loop exit
PB: predicated region body
PF: predicated region fallthrough
CT: control target
= control target key end

     0   :  { %s28_s0 = inlined_call_operand.vmem [shape: f32[2], index: 0, kind: input, shape index: {}]   ;;  %s29_s1 = inlined_call_operand.vmem [shape: f32[16,2], index: 1, kind: output, shape index: {}]  }
   0x1   :  { %v4_v0 = vld [vmem:[%s28_s0] ss:$0 sm:$0xff] }
   0x2   :  { %5 = vst [vmem:[%s29_s1] sm:$0xff] %v4_v0  ;;  %8 = vst [vmem:[%s29_s1 + $0x8] sm:$0xff] %v4_v0 }

// kernel: tile.54
= control target key start
LH: loop header
LB: loop body
LE: loop exit
PB: predicated region body
PF: predicated region fallthrough
CT: control target
= control target key end

     0   :  { %s131_s10 = smov 30   ;;  %s132_s11 = smov 26   ;;  %vm3_vm0 = vcmask 15360   ;;  %vm9_vm1 = vcmask 261360   ;;  %vm15_vm2 = vcmask 244960   ;;  %vm21_vm3 = vcmask 228560   ;;  %s207_s0 = inlined_call_operand.vmem [shape: f32[16,2], index: 0, kind: input, shape index: {}]   ;;  %s208_s1 = inlined_call_operand.vmem [shape: f32[1,32], index: 1, kind: output, shape index: {}]  }
   0x1   :  { %v101_v0 = vld [vmem:[%s207_s0 + $0xf] sm:$0x1]   ;;  %v103_v1 = vld [vmem:[%s207_s0 + $0xd] sm:$0x1]   ;;  %v102_v2 = vld [vmem:[%s207_s0 + $0xe] sm:$0x1]  }
   0x2   :  { %7 = vrot.lane.b32.xlu0 %v101_v0, %s131_s10  ;;  %19 = vrot.lane.b32.xlu1 %v103_v1, %s132_s11  ;;  %v104_v3 = vld [vmem:[%s207_s0 + $0xc] sm:$0x1]   ;;  %s133_s16 = smov 28   ;;  %s134_s17 = smov 24   ;;  %v105_v4 = vld [vmem:[%s207_s0 + $0xb] sm:$0x1]  }
   0x3   :  { %v106_v5 = vld [vmem:[%s207_s0 + $0xa] sm:$0x1]   ;;  %v2_v6 = vld [vmem:[%s207_s0] sm:$0x1]   ;;  %s135_s24 = smov 22   ;;  %s136_s25 = smov 20  }
   0x4   :  { %4 = vst.msk [vmem:[#allocation0] sm:$0x1] %vm3_vm0, %v2_v6   ;;  %v107_v7 = vld [vmem:[%s207_s0 + $0x9] sm:$0x1]   ;;  %v108_v8 = vld [vmem:[%s207_s0 + $0x8] sm:$0x1]  }
   0x5   :  { %s137_s30 = smov 18   ;;  %s138_s2 = smov 16   ;;  %v109_v9 = vld [vmem:[%s207_s0 + $0x7] sm:$0x1]   ;;  %v110_v10 = vld [vmem:[%s207_s0 + $0x6] sm:$0x1]  }
   0x6   :  { %13 = vrot.lane.b32.xlu0 %v102_v2, %s133_s16  ;;  %25 = vrot.lane.b32.xlu1 %v104_v3, %s134_s17  ;;  %s139_s7 = smov 14   ;;  %s140_s8 = smov 12   ;;  %v111_v11 = vld [vmem:[%s207_s0 + $0x5] sm:$0x1]   ;;  %v112_v12 = vld [vmem:[%s207_s0 + $0x4] sm:$0x1]  }
   0x7   :  { %s141_s13 = smov 10   ;;  %s142_s14 = smov 8   ;;  %v113_v13 = vld [vmem:[%s207_s0 + $0x3] sm:$0x1]   ;;  %v114_v14 = vld [vmem:[%s207_s0 + $0x2] sm:$0x1]  }
   0x8   :  { %s143_s19 = smov 6   ;;  %s144_s20 = smov 4   ;;  %v115_v15 = vld [vmem:[%s207_s0 + $0x1] sm:$0x1]   ;;  %vm27_vm4 = vcmask 212160   ;;  %vm33_vm5 = vcmask 195760  }
   0x9   :  { %s145_s0 = smov 2   ;;  %vm39_vm6 = vcmask 179360   ;;  %vm45_vm7 = vcmask 162960   ;;  %vm51_vm8 = vcmask 146560   ;;  %vm57_vm9 = vcmask 130160  }
   0xa   :  { %31 = vrot.lane.b32.xlu0 %v105_v4, %s135_s24  ;;  %37 = vrot.lane.b32.xlu1 %v106_v5, %s136_s25  ;;  %vm63_vm10 = vcmask 113760   ;;  %vm69_vm11 = vcmask 97360   ;;  %vm75_vm12 = vcmask 80960   ;;  %vm81_vm13 = vcmask 64560  }
   0xb   :  { %vm87_vm14 = vcmask 48160   ;;  %vm93_vm15 = vcmask 31760  }
   0xe   :  { %43 = vrot.lane.b32.xlu0 %v107_v7, %s137_s30  ;;  %49 = vrot.lane.b32.xlu1 %v108_v8, %s138_s2 }
  0x12   :  { %55 = vrot.lane.b32.xlu0 %v109_v9, %s139_s7  ;;  %61 = vrot.lane.b32.xlu1 %v110_v10, %s140_s8 }
  0x16   :  { %67 = vrot.lane.b32.xlu0 %v111_v11, %s141_s13  ;;  %73 = vrot.lane.b32.xlu1 %v112_v12, %s142_s14 }
  0x1a   :  { %79 = vrot.lane.b32.xlu0 %v113_v13, %s143_s19  ;;  %85 = vrot.lane.b32.xlu1 %v114_v14, %s144_s20 }
  0x1e   :  { %91 = vrot.lane.b32.xlu0 %v115_v15, %s145_s0 }
  0x74   :  { %v8_v16 = vpop.permute.xlu0 %7   ;;  %v20_v17 = vpop.permute.xlu1 %19  }
  0x75   :  { %10 = vst.msk [vmem:[#allocation0] sm:$0x1] %vm9_vm1, %v8_v16  }
  0x78   :  { %v14_v18 = vpop.permute.xlu0 %13   ;;  %v26_v19 = vpop.permute.xlu1 %25  }
  0x79   :  { %16 = vst.msk [vmem:[#allocation0] sm:$0x1] %vm15_vm2, %v14_v18  }
  0x7a   :  { %22 = vst.msk [vmem:[#allocation0] sm:$0x1] %vm21_vm3, %v20_v17  }
  0x7b   :  { %28 = vst.msk [vmem:[#allocation0] sm:$0x1] %vm27_vm4, %v26_v19  }
  0x7c   :  { %v32_v20 = vpop.permute.xlu0 %31   ;;  %v38_v21 = vpop.permute.xlu1 %37  }
  0x7d   :  { %34 = vst.msk [vmem:[#allocation0] sm:$0x1] %vm33_vm5, %v32_v20  }
  0x7e   :  { %40 = vst.msk [vmem:[#allocation0] sm:$0x1] %vm39_vm6, %v38_v21  }
  0x80   :  { %v44_v22 = vpop.permute.xlu0 %43   ;;  %v50_v23 = vpop.permute.xlu1 %49  }
  0x81   :  { %46 = vst.msk [vmem:[#allocation0] sm:$0x1] %vm45_vm7, %v44_v22  }
  0x82   :  { %52 = vst.msk [vmem:[#allocation0] sm:$0x1] %vm51_vm8, %v50_v23  }
  0x84   :  { %v56_v24 = vpop.permute.xlu0 %55   ;;  %v62_v25 = vpop.permute.xlu1 %61  }
  0x85   :  { %58 = vst.msk [vmem:[#allocation0] sm:$0x1] %vm57_vm9, %v56_v24  }
  0x86   :  { %64 = vst.msk [vmem:[#allocation0] sm:$0x1] %vm63_vm10, %v62_v25  }
  0x88   :  { %v68_v26 = vpop.permute.xlu0 %67   ;;  %v74_v27 = vpop.permute.xlu1 %73  }
  0x89   :  { %70 = vst.msk [vmem:[#allocation0] sm:$0x1] %vm69_vm11, %v68_v26  }
  0x8a   :  { %76 = vst.msk [vmem:[#allocation0] sm:$0x1] %vm75_vm12, %v74_v27  }
  0x8c   :  { %v80_v28 = vpop.permute.xlu0 %79   ;;  %v86_v29 = vpop.permute.xlu1 %85  }
  0x8d   :  { %82 = vst.msk [vmem:[#allocation0] sm:$0x1] %vm81_vm13, %v80_v28  }
  0x8e   :  { %88 = vst.msk [vmem:[#allocation0] sm:$0x1] %vm87_vm14, %v86_v29  }
  0x90   :  { %v92_v30 = vpop.permute.xlu0 %91  }
  0x91   :  { %94 = vst.msk [vmem:[#allocation0] sm:$0x1] %vm93_vm15, %v92_v30  }
  0x98   :  { %v98_v31 = vld [vmem:[#allocation0] sm:$0x1] }
  0x99   :  { %100 = vst [vmem:[%s208_s1] sm:$0x1] %v98_v31 }

// kernel: tile.68
= control target key start
LH: loop header
LB: loop body
LE: loop exit
PB: predicated region body
PF: predicated region fallthrough
CT: control target
= control target key end

     0   :  { %s40_s0 = inlined_call_operand.vmem [shape: f32[8], index: 0, kind: input, shape index: {}]   ;;  %s41_s1 = inlined_call_operand.vmem [shape: f32[32,8], index: 1, kind: output, shape index: {}]  }
   0x1   :  { %v4_v0 = vld [vmem:[%s40_s0] ss:$0 sm:$0xff] }
   0x2   :  { %5 = vst [vmem:[%s41_s1] sm:$0xff] %v4_v0  ;;  %12 = vst [vmem:[%s41_s1 + $0x8] sm:$0xff] %v4_v0 }
   0x3   :  { %13 = vst [vmem:[%s41_s1 + $0x10] sm:$0xff] %v4_v0  ;;  %14 = vst [vmem:[%s41_s1 + $0x18] sm:$0xff] %v4_v0 }

// kernel: tile.69
= control target key start
LH: loop header
LB: loop body
LE: loop exit
PB: predicated region body
PF: predicated region fallthrough
CT: control target
= control target key end

     0   :  { %s7_s6 = smov 3  ;;  %s21_s9 = smov 3  ;;  %vm4_vm0 = vcmask 64512   ;;  %vm11_vm1 = vcmask 1048512   ;;  %vm18_vm2 = vcmask 982912   ;;  %vm25_vm3 = vcmask 917312   ;;  %s232_s0 = inlined_call_operand.vmem [shape: f32[32,8], index: 0, kind: input, shape index: {}]   ;;  %s233_s1 = inlined_call_operand.vmem [shape: f32[1,256], index: 1, kind: output, shape index: {}]  }
   0x1   :  { %v122_v0 = vld [vmem:[%s232_s0 + $0xf] ss:$16 sm:%s7_s6]   ;;  %s153_s10 = smov 120   ;;  %v124_v1 = vld [vmem:[%s232_s0 + $0xd] ss:$16 sm:%s21_s9]   ;;  %s14_s13 = smov 3 }
   0x2   :  { %9 = vrot.lane.b32.xlu0 %v122_v0, %s153_s10  ;;  %s154_s14 = smov 104   ;;  %v123_v2 = vld [vmem:[%s232_s0 + $0xe] ss:$16 sm:%s14_s13]   ;;  %s28_s17 = smov 3  ;;  %vm32_vm4 = vcmask 851712   ;;  %vm39_vm5 = vcmask 786112  }
   0x3   :  { %23 = vrot.lane.b32.xlu1 %v124_v1, %s154_s14  ;;  %v125_v3 = vld [vmem:[%s232_s0 + $0xc] ss:$16 sm:%s28_s17]   ;;  %s35_s20 = smov 3  ;;  %s42_s21 = smov 3  ;;  %vm46_vm6 = vcmask 720512   ;;  %vm53_vm7 = vcmask 654912  }
   0x4   :  { %s155_s22 = smov 112   ;;  %s156_s23 = smov 96   ;;  %v126_v4 = vld [vmem:[%s232_s0 + $0xb] ss:$16 sm:%s35_s20]   ;;  %v127_v5 = vld [vmem:[%s232_s0 + $0xa] ss:$16 sm:%s42_s21]  }
   0x5   :  { %s49_s28 = smov 3  ;;  %s56_s29 = smov 3  ;;  %vm60_vm8 = vcmask 589312   ;;  %vm67_vm9 = vcmask 523712   ;;  %vm74_vm10 = vcmask 458112   ;;  %vm81_vm11 = vcmask 392512  }
   0x6   :  { %16 = vrot.lane.b32.xlu0 %v123_v2, %s155_s22  ;;  %s157_s30 = smov 88   ;;  %s158_s2 = smov 80   ;;  %v128_v6 = vld [vmem:[%s232_s0 + $0x9] ss:$16 sm:%s49_s28]   ;;  %vm88_vm12 = vcmask 326912   ;;  %vm95_vm13 = vcmask 261312  }
   0x7   :  { %30 = vrot.lane.b32.xlu1 %v125_v3, %s156_s23  ;;  %v129_v7 = vld [vmem:[%s232_s0 + $0x8] ss:$16 sm:%s56_s29]   ;;  %s63_s7 = smov 3  ;;  %s70_s8 = smov 3  ;;  %vm102_vm14 = vcmask 195712   ;;  %vm109_vm15 = vcmask 130112  }
   0x8   :  { %s159_s9 = smov 72   ;;  %s160_s10 = smov 64   ;;  %v130_v8 = vld [vmem:[%s232_s0 + $0x7] ss:$16 sm:%s63_s7]   ;;  %v131_v9 = vld [vmem:[%s232_s0 + $0x6] ss:$16 sm:%s70_s8]  }
   0x9   :  { %s2_s13 = smov 3  ;;  %s77_s16 = smov 3 }
   0xa   :  { %37 = vrot.lane.b32.xlu0 %v126_v4, %s157_s30  ;;  %v3_v10 = vld [vmem:[%s232_s0] ss:$16 sm:%s2_s13]   ;;  %s84_s19 = smov 3  ;;  %s161_s20 = smov 56  }
   0xb   :  { %44 = vrot.lane.b32.xlu1 %v127_v5, %s158_s2  ;;  %5 = vst.msk [vmem:[#allocation0] ss:$8 sm:$0x3] %vm4_vm0, %v3_v10   ;;  %s162_s21 = smov 48   ;;  %v132_v11 = vld [vmem:[%s232_s0 + $0x5] ss:$16 sm:%s77_s16]  }
   0xc   :  { %v133_v12 = vld [vmem:[%s232_s0 + $0x4] ss:$16 sm:%s84_s19]   ;;  %s91_s26 = smov 3  ;;  %s98_s27 = smov 3 }
   0xd   :  { %s163_s28 = smov 40   ;;  %s164_s29 = smov 32   ;;  %v134_v13 = vld [vmem:[%s232_s0 + $0x3] ss:$16 sm:%s91_s26]   ;;  %v135_v14 = vld [vmem:[%s232_s0 + $0x2] ss:$16 sm:%s98_s27]  }
   0xe   :  { %51 = vrot.lane.b32.xlu0 %v128_v6, %s159_s9  ;;  %s105_s5 = smov 3  ;;  %s165_s6 = smov 24  }
   0xf   :  { %58 = vrot.lane.b32.xlu1 %v129_v7, %s160_s10  ;;  %s166_s7 = smov 16   ;;  %v136_v15 = vld [vmem:[%s232_s0 + $0x1] ss:$16 sm:%s105_s5]   ;;  %s167_s0 = smov 8  }
  0x12   :  { %65 = vrot.lane.b32.xlu0 %v130_v8, %s161_s20 }
  0x13   :  { %72 = vrot.lane.b32.xlu1 %v131_v9, %s162_s21 }
  0x16   :  { %79 = vrot.lane.b32.xlu0 %v132_v11, %s163_s28 }
  0x17   :  { %86 = vrot.lane.b32.xlu1 %v133_v12, %s164_s29 }
  0x1a   :  { %93 = vrot.lane.b32.xlu0 %v134_v13, %s165_s6 }
  0x1b   :  { %100 = vrot.lane.b32.xlu1 %v135_v14, %s166_s7 }
  0x1e   :  { %107 = vrot.lane.b32.xlu0 %v136_v15, %s167_s0 }
  0x74   :  { %v10_v16 = vpop.permute.xlu0 %9  }
  0x75   :  { %12 = vst.msk [vmem:[#allocation0] ss:$8 sm:$0x3] %vm11_vm1, %v10_v16   ;;  %v24_v17 = vpop.permute.xlu1 %23  }
  0x78   :  { %v17_v18 = vpop.permute.xlu0 %16  }
  0x79   :  { %19 = vst.msk [vmem:[#allocation0] ss:$8 sm:$0x3] %vm18_vm2, %v17_v18   ;;  %v31_v19 = vpop.permute.xlu1 %30  }
  0x7a   :  { %26 = vst.msk [vmem:[#allocation0] ss:$8 sm:$0x3] %vm25_vm3, %v24_v17  }
  0x7b   :  { %33 = vst.msk [vmem:[#allocation0] ss:$8 sm:$0x3] %vm32_vm4, %v31_v19  }
  0x7c   :  { %v38_v20 = vpop.permute.xlu0 %37  }
  0x7d   :  { %40 = vst.msk [vmem:[#allocation0] ss:$8 sm:$0x3] %vm39_vm5, %v38_v20   ;;  %v45_v21 = vpop.permute.xlu1 %44  }
  0x7e   :  { %47 = vst.msk [vmem:[#allocation0] ss:$8 sm:$0x3] %vm46_vm6, %v45_v21  }
  0x80   :  { %v52_v22 = vpop.permute.xlu0 %51  }
  0x81   :  { %54 = vst.msk [vmem:[#allocation0] ss:$8 sm:$0x3] %vm53_vm7, %v52_v22   ;;  %v59_v23 = vpop.permute.xlu1 %58  }
  0x82   :  { %61 = vst.msk [vmem:[#allocation0] ss:$8 sm:$0x3] %vm60_vm8, %v59_v23  }
  0x84   :  { %v66_v24 = vpop.permute.xlu0 %65  }
  0x85   :  { %68 = vst.msk [vmem:[#allocation0] ss:$8 sm:$0x3] %vm67_vm9, %v66_v24   ;;  %v73_v25 = vpop.permute.xlu1 %72  }
  0x86   :  { %75 = vst.msk [vmem:[#allocation0] ss:$8 sm:$0x3] %vm74_vm10, %v73_v25  }
  0x88   :  { %v80_v26 = vpop.permute.xlu0 %79  }
  0x89   :  { %82 = vst.msk [vmem:[#allocation0] ss:$8 sm:$0x3] %vm81_vm11, %v80_v26   ;;  %v87_v27 = vpop.permute.xlu1 %86  }
  0x8a   :  { %89 = vst.msk [vmem:[#allocation0] ss:$8 sm:$0x3] %vm88_vm12, %v87_v27  }
  0x8c   :  { %v94_v28 = vpop.permute.xlu0 %93  }
  0x8d   :  { %96 = vst.msk [vmem:[#allocation0] ss:$8 sm:$0x3] %vm95_vm13, %v94_v28   ;;  %v101_v29 = vpop.permute.xlu1 %100  }
  0x8e   :  { %103 = vst.msk [vmem:[#allocation0] ss:$8 sm:$0x3] %vm102_vm14, %v101_v29  }
  0x90   :  { %v108_v30 = vpop.permute.xlu0 %107  }
  0x91   :  { %110 = vst.msk [vmem:[#allocation0] ss:$8 sm:$0x3] %vm109_vm15, %v108_v30  }
  0x98   :  { %v114_v31 = vld [vmem:[#allocation0] sm:$0x1]  ;;  %v118_v32 = vld [vmem:[#allocation0 + $0x8] sm:$0x1] }
  0x99   :  { %116 = vst [vmem:[%s233_s1] sm:$0x1] %v114_v31  ;;  %137 = vst [vmem:[%s233_s1 + $0x1] sm:$0x1] %v118_v32 }

</bundles_post_ra>
